<compile_context>
chip_gen: v6e
topology: v6e:2x2x1
jax: 0.10.0
libtpu: 0.0.40
codegen_flags: <defaults>
</compile_context>

<pallas_src>
import math

import jax
import jax.numpy as jnp
from jax import lax
from jax.experimental import pallas as pl
from jax.experimental.pallas import tpu as pltpu  # noqa: F401  (TPU backend import)

jax.config.update("jax_default_matmul_precision", "highest")

# ----------------------------- configuration --------------------------------
B = 2          # batch
T = 8          # sequence length
E = 32         # embed_dim
H = 4          # num heads
D = E // H     # head dim
N = B * T      # flattened (batch, time) rows
NEG = -1e30    # finite "-inf" for the additive mask (f32-safe)


# ------------------------------- kernel --------------------------------------
def causal_mha_kernel(
    x_ref,                                   # (B, T, E)
    wq_ref, bq_ref,                          # (E, E), (1, E)
    wk_ref, bk_ref,                          # (E, E), (1, E)
    wv_ref, bv_ref,                          # (E, E), (1, E)
    wo_ref, bo_ref,                          # (E, E), (1, E)
    mask_ref,                                # (N, N) additive block-causal mask
    o_ref,                                   # (B, T, E)
):
    x2 = x_ref[...].reshape(N, E)            # merge leading dims only (cheap)

    scale = 1.0 / math.sqrt(D)
    # Three separate projections (avoids slicing a fused 3E-wide qkv at
    # non-128-aligned lane offsets).  Scale folded into q once.
    q = (jnp.dot(x2, wq_ref[...], preferred_element_type=jnp.float32)
         + bq_ref[...]) * scale
    k = jnp.dot(x2, wk_ref[...], preferred_element_type=jnp.float32) + bk_ref[...]
    v = jnp.dot(x2, wv_ref[...], preferred_element_type=jnp.float32) + bv_ref[...]

    # Head-major stacks: (H, N, D).  Static lane slices + leading-dim stack.
    qh = jnp.stack([q[:, h * D:(h + 1) * D] for h in range(H)], axis=0)
    kh = jnp.stack([k[:, h * D:(h + 1) * D] for h in range(H)], axis=0)
    vh = jnp.stack([v[:, h * D:(h + 1) * D] for h in range(H)], axis=0)

    # One batched score matmul over all heads; rows are flattened (b, t).
    # Cross-batch pairs are computed then masked out (negligible waste at N=16;
    # for larger B*T batch over (B, H) instead).
    s = jnp.einsum('hnd,hmd->hnm', qh, kh,
                   preferred_element_type=jnp.float32)        # (H, N, N)
    s = s + mask_ref[...][None]                               # block-causal mask
    s = s - jnp.max(s, axis=-1, keepdims=True)
    p = jnp.exp(s)
    p = p * pl.reciprocal(jnp.sum(p, axis=-1, keepdims=True), approx=True)

    oh = jnp.einsum('hnm,hmd->hnd', p, vh,
                    preferred_element_type=jnp.float32)       # (H, N, D)

    # Concatenate heads once, single output projection.
    o_cat = jnp.concatenate([oh[h] for h in range(H)], axis=-1)   # (N, E)
    y = jnp.dot(o_cat, wo_ref[...], preferred_element_type=jnp.float32) + bo_ref[...]

    # Dropout: eval-mode identity.
    o_ref[...] = y.reshape(B, T, E).astype(o_ref.dtype)


# ------------------------------- wrapper --------------------------------------
def causal_self_attention(tokens, in_proj_w, in_proj_b, out_proj_w, out_proj_b):
    """tokens: (B, T, E); PyTorch-layout MultiheadAttention parameters."""
    wq = in_proj_w[0 * E:1 * E].T            # (E, E) so kernel does x @ w
    wk = in_proj_w[1 * E:2 * E].T
    wv = in_proj_w[2 * E:3 * E].T
    bq = in_proj_b[0 * E:1 * E].reshape(1, E)
    bk = in_proj_b[1 * E:2 * E].reshape(1, E)
    bv = in_proj_b[2 * E:3 * E].reshape(1, E)
    wo = out_proj_w.T                        # (E, E)
    bo = out_proj_b.reshape(1, E)

    # Additive block-causal mask over flattened (batch, time) rows:
    # row (b, t) may attend to (b', t') iff b == b' and t' <= t.
    r = jnp.arange(N)
    allowed = ((r[:, None] // T) == (r[None, :] // T)) & \
              ((r[:, None] % T) >= (r[None, :] % T))
    mask = jnp.where(allowed, 0.0, NEG).astype(jnp.float32)

    # Gridless call: every operand is a single whole-array VMEM block
    # (total footprint ~20 KB << VMEM on v5e/v6e/v7x), no pipeline overhead.
    return pl.pallas_call(
        causal_mha_kernel,
        out_shape=jax.ShapeDtypeStruct((B, T, E), jnp.float32),
    )(tokens, wq, bq, wk, bk, wv, bv, wo, bo, mask)


# ----------------------------- pure-JAX reference ----------------------------
def reference(tokens, in_proj_w, in_proj_b, out_proj_w, out_proj_b):
    wq, wk, wv = in_proj_w[:E], in_proj_w[E:2 * E], in_proj_w[2 * E:]
    bq, bk, bv = in_proj_b[:E], in_proj_b[E:2 * E], in_proj_b[2 * E:]
    q = tokens @ wq.T + bq
    k = tokens @ wk.T + bk
    v = tokens @ wv.T + bv

    def heads(t):  # (B, T, E) -> (B, H, T, D)
        return t.reshape(B, T, H, D).transpose(0, 2, 1, 3)

    qh, kh, vh = heads(q), heads(k), heads(v)
    s = jnp.einsum('bhtd,bhsd->bhts', qh, kh) / math.sqrt(D)
    causal = jnp.tril(jnp.ones((T, T), bool))
    s = jnp.where(causal, s, -jnp.inf)
    p = jax.nn.softmax(s, axis=-1)
    o = jnp.einsum('bhts,bhsd->bhtd', p, vh).transpose(0, 2, 1, 3).reshape(B, T, E)
    return o @ out_proj_w.T + out_proj_b      # dropout: eval-mode identity


# --------------------------------- driver -------------------------------------
if __name__ == "__main__":
    key = jax.random.PRNGKey(0)
    kx, k1, k2, k3, k4 = jax.random.split(key, 5)
    tokens = jax.random.normal(kx, (B, T, E), jnp.float32)
    w_std = 0.1
    in_proj_w = w_std * jax.random.normal(k1, (3 * E, E), jnp.float32)
    in_proj_b = w_std * jax.random.normal(k2, (3 * E,), jnp.float32)
    out_proj_w = w_std * jax.random.normal(k3, (E, E), jnp.float32)
    out_proj_b = w_std * jax.random.normal(k4, (E,), jnp.float32)

    out = jax.block_until_ready(
        causal_self_attention(tokens, in_proj_w, in_proj_b, out_proj_w, out_proj_b))
    ref = jax.block_until_ready(
        reference(tokens, in_proj_w, in_proj_b, out_proj_w, out_proj_b))

    assert out.shape == (B, T, E)
    max_err = float(jnp.max(jnp.abs(out - ref)))
    # Tolerance leaves headroom for the approximate EUP reciprocal in softmax.
    assert jnp.allclose(out, ref, rtol=5e-3, atol=5e-3), f"max err {max_err}"
    print("KERNEL_OK")
</pallas_src>

<mosaic_0001>
module attributes {stable_mosaic.version = 11 : i64} {
  func.func @causal_mha_kernel(%arg0: memref<2x8x32xf32, #tpu.memory_space<vmem>>, %arg1: memref<32x32xf32, #tpu.memory_space<vmem>>, %arg2: memref<1x32xf32, #tpu.memory_space<vmem>>, %arg3: memref<32x32xf32, #tpu.memory_space<vmem>>, %arg4: memref<1x32xf32, #tpu.memory_space<vmem>>, %arg5: memref<32x32xf32, #tpu.memory_space<vmem>>, %arg6: memref<1x32xf32, #tpu.memory_space<vmem>>, %arg7: memref<32x32xf32, #tpu.memory_space<vmem>>, %arg8: memref<1x32xf32, #tpu.memory_space<vmem>>, %arg9: memref<16x16xf32, #tpu.memory_space<vmem>>, %arg10: memref<2x8x32xf32, #tpu.memory_space<vmem>>) attributes {dimension_semantics = [], scalar_prefetch = 0 : i64, scratch_operands = 0 : i64, tpu.core_type = #tpu.core_type<tc>} {
    %c0 = arith.constant 0 : index
    %c0_0 = arith.constant 0 : index
    %c0_1 = arith.constant 0 : index
    %0 = vector.load %arg0[%c0, %c0_0, %c0_1] : memref<2x8x32xf32, #tpu.memory_space<vmem>>, vector<2x8x32xf32>
    %1 = vector.shape_cast %0 : vector<2x8x32xf32> to vector<16x32xf32>
    %c0_2 = arith.constant 0 : index
    %c0_3 = arith.constant 0 : index
    %2 = vector.load %arg1[%c0_2, %c0_3] : memref<32x32xf32, #tpu.memory_space<vmem>>, vector<32x32xf32>
    %cst = arith.constant dense<0.000000e+00> : vector<16x32xf32>
    %3 = tpu.matmul %1, %2, %cst {dimension_numbers = #tpu.dot_dimension_numbers<[1], [0], [0], [1], [0, 0, 1, 1], [], []>, precision = #tpu.contract_precision<fp32>} : vector<16x32xf32>, vector<32x32xf32>, vector<16x32xf32> -> vector<16x32xf32>
    %c0_4 = arith.constant 0 : index
    %c0_5 = arith.constant 0 : index
    %4 = vector.load %arg2[%c0_4, %c0_5] : memref<1x32xf32, #tpu.memory_space<vmem>>, vector<1x32xf32>
    %5 = vector.broadcast %4 : vector<1x32xf32> to vector<16x32xf32>
    %6 = arith.addf %3, %5 : vector<16x32xf32>
    %cst_6 = arith.constant 0.353553385 : f32
    %7 = vector.broadcast %cst_6 : f32 to vector<16x32xf32>
    %8 = arith.mulf %6, %7 : vector<16x32xf32>
    %c0_7 = arith.constant 0 : index
    %c0_8 = arith.constant 0 : index
    %9 = vector.load %arg3[%c0_7, %c0_8] : memref<32x32xf32, #tpu.memory_space<vmem>>, vector<32x32xf32>
    %cst_9 = arith.constant dense<0.000000e+00> : vector<16x32xf32>
    %10 = tpu.matmul %1, %9, %cst_9 {dimension_numbers = #tpu.dot_dimension_numbers<[1], [0], [0], [1], [0, 0, 1, 1], [], []>, precision = #tpu.contract_precision<fp32>} : vector<16x32xf32>, vector<32x32xf32>, vector<16x32xf32> -> vector<16x32xf32>
    %c0_10 = arith.constant 0 : index
    %c0_11 = arith.constant 0 : index
    %11 = vector.load %arg4[%c0_10, %c0_11] : memref<1x32xf32, #tpu.memory_space<vmem>>, vector<1x32xf32>
    %12 = vector.broadcast %11 : vector<1x32xf32> to vector<16x32xf32>
    %13 = arith.addf %10, %12 : vector<16x32xf32>
    %c0_12 = arith.constant 0 : index
    %c0_13 = arith.constant 0 : index
    %14 = vector.load %arg5[%c0_12, %c0_13] : memref<32x32xf32, #tpu.memory_space<vmem>>, vector<32x32xf32>
    %cst_14 = arith.constant dense<0.000000e+00> : vector<16x32xf32>
    %15 = tpu.matmul %1, %14, %cst_14 {dimension_numbers = #tpu.dot_dimension_numbers<[1], [0], [0], [1], [0, 0, 1, 1], [], []>, precision = #tpu.contract_precision<fp32>} : vector<16x32xf32>, vector<32x32xf32>, vector<16x32xf32> -> vector<16x32xf32>
    %c0_15 = arith.constant 0 : index
    %c0_16 = arith.constant 0 : index
    %16 = vector.load %arg6[%c0_15, %c0_16] : memref<1x32xf32, #tpu.memory_space<vmem>>, vector<1x32xf32>
    %17 = vector.broadcast %16 : vector<1x32xf32> to vector<16x32xf32>
    %18 = arith.addf %15, %17 : vector<16x32xf32>
    %19 = vector.extract_strided_slice %8 {offsets = [0, 0], sizes = [16, 8], strides = [1, 1]} : vector<16x32xf32> to vector<16x8xf32>
    %20 = vector.extract_strided_slice %8 {offsets = [0, 8], sizes = [16, 8], strides = [1, 1]} : vector<16x32xf32> to vector<16x8xf32>
    %21 = vector.extract_strided_slice %8 {offsets = [0, 16], sizes = [16, 8], strides = [1, 1]} : vector<16x32xf32> to vector<16x8xf32>
    %22 = vector.extract_strided_slice %8 {offsets = [0, 24], sizes = [16, 8], strides = [1, 1]} : vector<16x32xf32> to vector<16x8xf32>
    %23 = vector.shape_cast %19 : vector<16x8xf32> to vector<1x16x8xf32>
    %24 = vector.shape_cast %20 : vector<16x8xf32> to vector<1x16x8xf32>
    %25 = vector.shape_cast %21 : vector<16x8xf32> to vector<1x16x8xf32>
    %26 = vector.shape_cast %22 : vector<16x8xf32> to vector<1x16x8xf32>
    %27 = tpu.concatenate %23, %24, %25, %26 in 0 : vector<1x16x8xf32>, vector<1x16x8xf32>, vector<1x16x8xf32>, vector<1x16x8xf32> -> vector<4x16x8xf32>
    %28 = vector.extract_strided_slice %13 {offsets = [0, 0], sizes = [16, 8], strides = [1, 1]} : vector<16x32xf32> to vector<16x8xf32>
    %29 = vector.extract_strided_slice %13 {offsets = [0, 8], sizes = [16, 8], strides = [1, 1]} : vector<16x32xf32> to vector<16x8xf32>
    %30 = vector.extract_strided_slice %13 {offsets = [0, 16], sizes = [16, 8], strides = [1, 1]} : vector<16x32xf32> to vector<16x8xf32>
    %31 = vector.extract_strided_slice %13 {offsets = [0, 24], sizes = [16, 8], strides = [1, 1]} : vector<16x32xf32> to vector<16x8xf32>
    %32 = vector.shape_cast %28 : vector<16x8xf32> to vector<1x16x8xf32>
    %33 = vector.shape_cast %29 : vector<16x8xf32> to vector<1x16x8xf32>
    %34 = vector.shape_cast %30 : vector<16x8xf32> to vector<1x16x8xf32>
    %35 = vector.shape_cast %31 : vector<16x8xf32> to vector<1x16x8xf32>
    %36 = tpu.concatenate %32, %33, %34, %35 in 0 : vector<1x16x8xf32>, vector<1x16x8xf32>, vector<1x16x8xf32>, vector<1x16x8xf32> -> vector<4x16x8xf32>
    %37 = vector.extract_strided_slice %18 {offsets = [0, 0], sizes = [16, 8], strides = [1, 1]} : vector<16x32xf32> to vector<16x8xf32>
    %38 = vector.extract_strided_slice %18 {offsets = [0, 8], sizes = [16, 8], strides = [1, 1]} : vector<16x32xf32> to vector<16x8xf32>
    %39 = vector.extract_strided_slice %18 {offsets = [0, 16], sizes = [16, 8], strides = [1, 1]} : vector<16x32xf32> to vector<16x8xf32>
    %40 = vector.extract_strided_slice %18 {offsets = [0, 24], sizes = [16, 8], strides = [1, 1]} : vector<16x32xf32> to vector<16x8xf32>
    %41 = vector.shape_cast %37 : vector<16x8xf32> to vector<1x16x8xf32>
    %42 = vector.shape_cast %38 : vector<16x8xf32> to vector<1x16x8xf32>
    %43 = vector.shape_cast %39 : vector<16x8xf32> to vector<1x16x8xf32>
    %44 = vector.shape_cast %40 : vector<16x8xf32> to vector<1x16x8xf32>
    %45 = tpu.concatenate %41, %42, %43, %44 in 0 : vector<1x16x8xf32>, vector<1x16x8xf32>, vector<1x16x8xf32>, vector<1x16x8xf32> -> vector<4x16x8xf32>
    "tpu.trace_start"() <{level = 10 : i32, message = "hnd,hmd->hnm"}> : () -> ()
    %cst_17 = arith.constant dense<0.000000e+00> : vector<4x16x16xf32>
    %46 = tpu.matmul %27, %36, %cst_17 {dimension_numbers = #tpu.dot_dimension_numbers<[2], [2], [1], [1], [0, 0, 0, 1, 1, 1], [0], [0]>, precision = #tpu.contract_precision<fp32>} : vector<4x16x8xf32>, vector<4x16x8xf32>, vector<4x16x16xf32> -> vector<4x16x16xf32>
    "tpu.trace_stop"() : () -> ()
    %c0_18 = arith.constant 0 : index
    %c0_19 = arith.constant 0 : index
    %47 = vector.load %arg9[%c0_18, %c0_19] : memref<16x16xf32, #tpu.memory_space<vmem>>, vector<16x16xf32>
    %48 = vector.shape_cast %47 : vector<16x16xf32> to vector<1x16x16xf32>
    %49 = vector.broadcast %48 : vector<1x16x16xf32> to vector<4x16x16xf32>
    %50 = arith.addf %46, %49 : vector<4x16x16xf32>
    %cst_20 = arith.constant dense<0xFF800000> : vector<4x16xf32>
    %51 = vector.multi_reduction <maximumf>, %50, %cst_20 [2] : vector<4x16x16xf32> to vector<4x16xf32>
    %52 = vector.shape_cast %51 : vector<4x16xf32> to vector<4x16x1xf32>
    %53 = vector.broadcast %52 : vector<4x16x1xf32> to vector<4x16x16xf32>
    %54 = arith.subf %50, %53 : vector<4x16x16xf32>
    %55 = math.exp %54 : vector<4x16x16xf32>
    %cst_21 = arith.constant dense<0.000000e+00> : vector<4x16xf32>
    %56 = vector.multi_reduction <add>, %55, %cst_21 [2] : vector<4x16x16xf32> to vector<4x16xf32>
    %57 = vector.shape_cast %56 : vector<4x16xf32> to vector<4x16x1xf32>
    %58 = tpu.reciprocal %57 {approx = true} : vector<4x16x1xf32> -> vector<4x16x1xf32>
    %59 = vector.broadcast %58 : vector<4x16x1xf32> to vector<4x16x16xf32>
    %60 = arith.mulf %55, %59 : vector<4x16x16xf32>
    "tpu.trace_start"() <{level = 10 : i32, message = "hnm,hmd->hnd"}> : () -> ()
    %cst_22 = arith.constant dense<0.000000e+00> : vector<4x16x8xf32>
    %61 = tpu.matmul %60, %45, %cst_22 {dimension_numbers = #tpu.dot_dimension_numbers<[2], [1], [1], [2], [0, 0, 0, 1, 1, 2], [0], [0]>, precision = #tpu.contract_precision<fp32>} : vector<4x16x16xf32>, vector<4x16x8xf32>, vector<4x16x8xf32> -> vector<4x16x8xf32>
    "tpu.trace_stop"() : () -> ()
    %62 = vector.extract_strided_slice %61 {offsets = [0, 0, 0], sizes = [1, 16, 8], strides = [1, 1, 1]} : vector<4x16x8xf32> to vector<1x16x8xf32>
    %63 = vector.shape_cast %62 : vector<1x16x8xf32> to vector<16x8xf32>
    %64 = vector.extract_strided_slice %61 {offsets = [1, 0, 0], sizes = [1, 16, 8], strides = [1, 1, 1]} : vector<4x16x8xf32> to vector<1x16x8xf32>
    %65 = vector.shape_cast %64 : vector<1x16x8xf32> to vector<16x8xf32>
    %66 = vector.extract_strided_slice %61 {offsets = [2, 0, 0], sizes = [1, 16, 8], strides = [1, 1, 1]} : vector<4x16x8xf32> to vector<1x16x8xf32>
    %67 = vector.shape_cast %66 : vector<1x16x8xf32> to vector<16x8xf32>
    %68 = vector.extract_strided_slice %61 {offsets = [3, 0, 0], sizes = [1, 16, 8], strides = [1, 1, 1]} : vector<4x16x8xf32> to vector<1x16x8xf32>
    %69 = vector.shape_cast %68 : vector<1x16x8xf32> to vector<16x8xf32>
    %70 = tpu.concatenate %63, %65, %67, %69 in 1 : vector<16x8xf32>, vector<16x8xf32>, vector<16x8xf32>, vector<16x8xf32> -> vector<16x32xf32>
    %c0_23 = arith.constant 0 : index
    %c0_24 = arith.constant 0 : index
    %71 = vector.load %arg7[%c0_23, %c0_24] : memref<32x32xf32, #tpu.memory_space<vmem>>, vector<32x32xf32>
    %cst_25 = arith.constant dense<0.000000e+00> : vector<16x32xf32>
    %72 = tpu.matmul %70, %71, %cst_25 {dimension_numbers = #tpu.dot_dimension_numbers<[1], [0], [0], [1], [0, 0, 1, 1], [], []>, precision = #tpu.contract_precision<fp32>} : vector<16x32xf32>, vector<32x32xf32>, vector<16x32xf32> -> vector<16x32xf32>
    %c0_26 = arith.constant 0 : index
    %c0_27 = arith.constant 0 : index
    %73 = vector.load %arg8[%c0_26, %c0_27] : memref<1x32xf32, #tpu.memory_space<vmem>>, vector<1x32xf32>
    %74 = vector.broadcast %73 : vector<1x32xf32> to vector<16x32xf32>
    %75 = arith.addf %72, %74 : vector<16x32xf32>
    %76 = vector.shape_cast %75 : vector<16x32xf32> to vector<2x8x32xf32>
    %c0_28 = arith.constant 0 : index
    %c0_29 = arith.constant 0 : index
    %c0_30 = arith.constant 0 : index
    %77 = vector.load %arg10[%c0_28, %c0_29, %c0_30] : memref<2x8x32xf32, #tpu.memory_space<vmem>>, vector<2x8x32xf32>
    tpu.vector_store %arg10[%c0_28, %c0_29, %c0_30], %76 {strides = array<i32>} : memref<2x8x32xf32, #tpu.memory_space<vmem>>, vector<2x8x32xf32>,
    return
  }
}

</mosaic_0001>

<bundles_post_ra>
// kernel: tpu_custom_call.1
= control target key start
LH: loop header
LB: loop body
LE: loop exit
PB: predicated region body
PF: predicated region fallthrough
CT: control target
= control target key end

     0   :  { %15 = vsyncpa [#allocation3], 0  ;;  %s8608_s0 = inlined_call_operand.hbm [shape: f32[2,8,32], index: 0, kind: input, shape index: {}]   ;;  %s8609_s1 = inlined_call_operand.hbm [shape: f32[32,32], index: 1, kind: input, shape index: {}]   ;;  %s8610_s2 = inlined_call_operand.hbm [shape: f32[1,32], index: 2, kind: input, shape index: {}]   ;;  %s8611_s3 = inlined_call_operand.hbm [shape: f32[32,32], index: 3, kind: input, shape index: {}]   ;;  %s8612_s4 = inlined_call_operand.hbm [shape: f32[1,32], index: 4, kind: input, shape index: {}]   ;;  %s8613_s5 = inlined_call_operand.hbm [shape: f32[32,32], index: 5, kind: input, shape index: {}]   ;;  %s8614_s6 = inlined_call_operand.hbm [shape: f32[1,32], index: 6, kind: input, shape index: {}]   ;;  %s8615_s7 = inlined_call_operand.hbm [shape: f32[32,32], index: 7, kind: input, shape index: {}]   ;;  %s8616_s8 = inlined_call_operand.hbm [shape: f32[1,32], index: 8, kind: input, shape index: {}]   ;;  %s8617_s9 = inlined_call_operand.vmem [shape: f32[16,16], index: 9, kind: input, shape index: {}]   ;;  %s8618_s10 = inlined_call_operand.hbm [shape: f32[2,8,32], index: 10, kind: output, shape index: {}]  }
   0x1   :  { %16 = vsyncpa [#allocation6], 0 }
   0x2   :  { %17 = vsyncpa [#allocation9], 0 }
   0x3   :  { %18 = vsyncpa [#allocation12], 0 }
   0x4   :  { %19 = vsyncpa [#allocation15], 0 }
   0x5   :  { %20 = vsyncpa [#allocation4], 0  ;;  %s7790_s13 = smov [#allocation5]   ;;  %s7791_s15 = smov [#allocation8]  }
   0x6   :  { %s38_s14 = sshll.u32 %s7790_s13, 4  ;;  %s60_s16 = sshll.u32 %s7791_s15, 4  ;;  %s39_s14 = int_to_ptr.vmem [resolvable:$true] %s38_s14  ;;  %s61_s16 = int_to_ptr.vmem [resolvable:$true] %s60_s16 }
   0x7   :  { %s7586_s17 = scalar_lea.vmem %s39_s14, 512  ;;  %p7591_p1 = scmp.lt.s32.totalorder %s39_s14, %s39_s14 }
   0x8   :  { %p7587_p0 = scmp.ne.s32.totalorder %s39_s14, %s7586_s17  ;;  %p7592_p2 = scmp.lt.s32.totalorder %s7586_s17, %s7586_s17 }
   0xa   :  { %p7593_p3 = por %p7592_p2, %p7591_p1 }
   0xc   :  { %p7594_p4 = pnand %p7593_p3, %p7587_p0 }
   0xe   :  { %7597 = shalt.err (!%p7594_p4)
}
   0xf   :  { %s7792_s18 = smov 128   ;;  %s7793_s19 = smov 8  }
  0x10   :  { %44 = dma.hbm_to_vmem [thread:$0]  %s8609_s1, 512, %s39_s14, [#allocation6], %s7792_s18, %s7792_s18, %s7793_s19  }
  0x11   :  { %s7606_s22 = scalar_lea.vmem %s61_s16, 512  ;;  %p7611_p6 = scmp.lt.s32.totalorder %s61_s16, %s61_s16 }
  0x12   :  { %p7607_p5 = scmp.ne.s32.totalorder %s61_s16, %s7606_s22  ;;  %p7612_p7 = scmp.lt.s32.totalorder %s7606_s22, %s7606_s22 }
  0x14   :  { %p7613_p8 = por %p7612_p7, %p7611_p6 }
  0x16   :  { %p7614_p9 = pnand %p7613_p8, %p7607_p5 }
  0x18   :  { %7617 = shalt.err (!%p7614_p9)
}
  0x19   :  { %66 = dma.hbm_to_vmem [thread:$0]  %s8611_s3, 512, %s61_s16, [#allocation9], %s7792_s18, %s7792_s18, %s7793_s19  }
  0x1a   :  { %s7794_s25 = smov [#allocation11]   ;;  %s7795_s27 = smov [#allocation14]  }
  0x1b   :  { %s82_s26 = sshll.u32 %s7794_s25, 4  ;;  %s104_s28 = sshll.u32 %s7795_s27, 4  ;;  %s83_s26 = int_to_ptr.vmem [resolvable:$true] %s82_s26  ;;  %s105_s28 = int_to_ptr.vmem [resolvable:$true] %s104_s28 }
  0x1c   :  { %s7626_s1 = scalar_lea.vmem %s83_s26, 512  ;;  %p7631_p11 = scmp.lt.s32.totalorder %s83_s26, %s83_s26 }
  0x1d   :  { %p7627_p10 = scmp.ne.s32.totalorder %s83_s26, %s7626_s1  ;;  %p7632_p12 = scmp.lt.s32.totalorder %s7626_s1, %s7626_s1 }
  0x1f   :  { %p7633_p13 = por %p7632_p12, %p7631_p11 }
  0x21   :  { %p7634_p0 = pnand %p7633_p13, %p7627_p10 }
  0x23   :  { %7637 = shalt.err (!%p7634_p0)
}
  0x24   :  { %88 = dma.hbm_to_vmem [thread:$0]  %s8613_s5, 512, %s83_s26, [#allocation12], %s7792_s18, %s7792_s18, %s7793_s19  }
  0x25   :  { %s7646_s3 = scalar_lea.vmem %s105_s28, 512  ;;  %p7651_p2 = scmp.lt.s32.totalorder %s105_s28, %s105_s28 }
  0x26   :  { %p7647_p1 = scmp.ne.s32.totalorder %s105_s28, %s7646_s3  ;;  %p7652_p3 = scmp.lt.s32.totalorder %s7646_s3, %s7646_s3 }
  0x28   :  { %p7653_p4 = por %p7652_p3, %p7651_p2 }
  0x2a   :  { %p7654_p5 = pnand %p7653_p4, %p7647_p1 }
  0x2c   :  { %7657 = shalt.err (!%p7654_p5)
}
  0x2d   :  { %110 = dma.hbm_to_vmem [thread:$0]  %s8615_s7, 512, %s105_s28, [#allocation15], %s7792_s18, %s7792_s18, %s7793_s19  }
  0x2e   :  { %s7796_s13 = smov [#allocation2]   ;;  %s7797_s15 = smov [#allocation7]  }
  0x2f   :  { %s26_s14 = sshll.u32 %s7796_s13, 4  ;;  %s51_s16 = sshll.u32 %s7797_s15, 4  ;;  %s27_s14 = int_to_ptr.vmem [resolvable:$true] %s26_s14  ;;  %s52_s16 = int_to_ptr.vmem [resolvable:$true] %s51_s16 }
  0x30   :  { %s7666_s5 = scalar_lea.vmem %s27_s14, 256  ;;  %p7671_p7 = scmp.lt.s32.totalorder %s27_s14, %s27_s14 }
  0x31   :  { %p7667_p6 = scmp.ne.s32.totalorder %s27_s14, %s7666_s5  ;;  %p7672_p8 = scmp.lt.s32.totalorder %s7666_s5, %s7666_s5 }
  0x33   :  { %p7673_p9 = por %p7672_p8, %p7671_p7 }
  0x35   :  { %p7674_p10 = pnand %p7673_p9, %p7667_p6 }
  0x37   :  { %7677 = shalt.err (!%p7674_p10)
}
  0x38   :  { %32 = dma.hbm_to_vmem [thread:$0]  %s8608_s0, 256, %s27_s14, [#allocation3], %s7792_s18, %s7792_s18, %s7793_s19  }
  0x39   :  { %s7686_s7 = scalar_lea.vmem %s52_s16, 16  ;;  %s7690_s21 = scalar_lea.vmem %s52_s16, 32 }
  0x3a   :  { %p7687_p11 = scmp.ne.s32.totalorder %s52_s16, %s7686_s7  ;;  %p7691_p12 = scmp.lt.s32.totalorder %s52_s16, %s52_s16 }
  0x3b   :  { %p7692_p13 = scmp.lt.s32.totalorder %s7690_s21, %s7686_s7 }
  0x3d   :  { %p7693_p0 = por %p7692_p13, %p7691_p12 }
  0x3f   :  { %p7694_p1 = pnand %p7693_p0, %p7687_p11 }
  0x41   :  { %7697 = shalt.err (!%p7694_p1)
}
  0x42   :  { %54 = dma.hbm_to_vmem [thread:$0]  %s8610_s2, 16, %s52_s16, [#allocation6]  }
  0x43   :  { %s7798_s24 = smov [#allocation10]   ;;  %s7799_s26 = smov [#allocation13]  }
  0x44   :  { %s73_s25 = sshll.u32 %s7798_s24, 4  ;;  %s95_s27 = sshll.u32 %s7799_s26, 4  ;;  %s74_s25 = int_to_ptr.vmem [resolvable:$true] %s73_s25  ;;  %s96_s27 = int_to_ptr.vmem [resolvable:$true] %s95_s27 }
  0x45   :  { %s7706_s28 = scalar_lea.vmem %s74_s25, 16  ;;  %s7710_s0 = scalar_lea.vmem %s74_s25, 32 }
  0x46   :  { %p7707_p2 = scmp.ne.s32.totalorder %s74_s25, %s7706_s28  ;;  %p7711_p3 = scmp.lt.s32.totalorder %s74_s25, %s74_s25 }
  0x47   :  { %p7712_p4 = scmp.lt.s32.totalorder %s7710_s0, %s7706_s28 }
  0x49   :  { %p7713_p5 = por %p7712_p4, %p7711_p3 }
  0x4b   :  { %p7714_p6 = pnand %p7713_p5, %p7707_p2 }
  0x4d   :  { %7717 = shalt.err (!%p7714_p6)
}
  0x4e   :  { %76 = dma.hbm_to_vmem [thread:$0]  %s8612_s4, 16, %s74_s25, [#allocation9]  }
  0x4f   :  { %s7726_s30 = scalar_lea.vmem %s96_s27, 16  ;;  %s7730_s2 = scalar_lea.vmem %s96_s27, 32 }
  0x50   :  { %p7727_p7 = scmp.ne.s32.totalorder %s96_s27, %s7726_s30  ;;  %p7731_p8 = scmp.lt.s32.totalorder %s96_s27, %s96_s27 }
  0x51   :  { %p7732_p9 = scmp.lt.s32.totalorder %s7730_s2, %s7726_s30 }
  0x53   :  { %p7733_p10 = por %p7732_p9, %p7731_p8 }
  0x55   :  { %p7734_p11 = pnand %p7733_p10, %p7727_p7 }
  0x57   :  { %7737 = shalt.err (!%p7734_p11)
}
  0x58   :  { %98 = dma.hbm_to_vmem [thread:$0]  %s8614_s6, 16, %s96_s27, [#allocation12]  }
  0x59   :  { %s7800_s12 = smov [#allocation16]  }
  0x5a   :  { %s117_s13 = sshll.u32 %s7800_s12, 4  ;;  %s118_s13 = int_to_ptr.vmem [resolvable:$true] %s117_s13 }
  0x5b   :  { %s7746_s14 = scalar_lea.vmem %s118_s13, 16  ;;  %s7750_s15 = scalar_lea.vmem %s118_s13, 32 }
  0x5c   :  { %p7747_p12 = scmp.ne.s32.totalorder %s118_s13, %s7746_s14  ;;  %p7751_p13 = scmp.lt.s32.totalorder %s118_s13, %s118_s13 }
  0x5d   :  { %p7752_p0 = scmp.lt.s32.totalorder %s7750_s15, %s7746_s14 }
  0x5f   :  { %p7753_p1 = por %p7752_p0, %p7751_p13 }
  0x61   :  { %p7754_p2 = pnand %p7753_p1, %p7747_p12 }
  0x63   :  { %7757 = shalt.err (!%p7754_p2)
}
  0x64   :  { %120 = dma.hbm_to_vmem [thread:$0]  %s8616_s8, 16, %s118_s13, [#allocation15]  }
  0x65   :  { %7778 = dma.done.wait [#allocation3], 256  }
  0x66   :  { %7779 = vsyncadd [#allocation3], 4294967040 }
  0x67   :  { %7780 = dma.done.wait [#allocation6], 528  }
  0x68   :  { %7781 = vsyncadd [#allocation6], 4294966768 }
  0x69   :  { %7782 = dma.done.wait [#allocation9], 528  }
  0x6a   :  { %7783 = vsyncadd [#allocation9], 4294966768 }
  0x6b   :  { %7784 = dma.done.wait [#allocation12], 528  }
  0x6c   :  { %7785 = vsyncadd [#allocation12], 4294966768 }
  0x6d   :  { %7786 = dma.done.wait [#allocation15], 528  }
  0x6e   :  { %7787 = vsyncadd [#allocation15], 4294966768  ;;  %vm163_vm0 = vcmask 261120   ;;  %v155_v0 = vld [vmem:[#allocation5 + $0x18] sm:$0xff]  ;;  %v154_v1 = vld [vmem:[#allocation5 + $0x10] sm:$0xff]  ;;  %vm1828_vm1 = vcmask 64512  }
  0x6f   :  { %v153_v2 = vld [vmem:[#allocation5 + $0x8] sm:$0xff]  ;;  %v7904_v3 = vand.u32 4294901760, %v155_v0  ;;  %v7906_v4 = vand.u32 4294901760, %v154_v1  ;;  %v152_v6 = vld [vmem:[#allocation5] sm:$0xff]  ;;  %v150_v7 = vld [vmem:[#allocation2] sm:$0xff]  ;;  %s7801_s6 = smov 120  }
  0x70   :  { %v7908_v5 = vand.u32 4294901760, %v153_v2  ;;  %v151_v8 = vld [vmem:[#allocation2 + $0x8] sm:$0xff]  ;;  %v7910_v9 = vand.u32 4294901760, %v152_v6  ;;  %v165_v10 = vsel %vm163_vm0, %v150_v7, 0  ;;  %v701_v42 = vld [vmem:[#allocation8 + $0x8] sm:$0xff]  ;;  %v700_v43 = vld [vmem:[#allocation8] sm:$0xff] }
  0x71   :  { %v168_v11 = vsel %vm163_vm0, %v151_v8, 0  ;;  %6929 = vmatprep.subr.mxu0 %v7904_v3  ;;  %v285_v12 = vsub.f32 %v155_v0, %v7904_v3  ;;  %v7916_v13 = vand.u32 4294901760, %v165_v10  ;;  %v292_v14 = vsub.f32 %v154_v1, %v7906_v4  ;;  %v703_v38 = vld [vmem:[#allocation8 + $0x18] sm:$0xff]  ;;  %v702_v39 = vld [vmem:[#allocation8 + $0x10] sm:$0xff]  ;;  %v1239_v7 = vld [vmem:[#allocation11] sm:$0xff]  ;;  %s7802_s8 = smov 112  }
  0x72   :  { %v7919_v15 = vand.u32 4294901760, %v168_v11  ;;  %6930 = vmatpush3.msra.mxu0 %v7904_v3  ;;  %v299_v16 = vsub.f32 %v153_v2, %v7908_v5  ;;  %v306_v17 = vsub.f32 %v152_v6, %v7910_v9  ;;  %v7961_v40 = vand.u32 4294901760, %v703_v38  ;;  %v1242_v62 = vld [vmem:[#allocation11 + $0x18] sm:$0xff]  ;;  %v1241_v0 = vld [vmem:[#allocation11 + $0x10] sm:$0xff]  ;;  %s7803_s5 = smov 104   ;;  %s7805_s22 = smov 24  }
  0x73   :  { %6931 = vmatprep.subr.mxu0 %v7906_v4  ;;  %v286_v18 = vand.u32 4294901760, %v285_v12  ;;  %v7926_v19 = vsub.f32 %v165_v10, %v7916_v13  ;;  %v293_v20 = vand.u32 4294901760, %v292_v14  ;;  %6948 = vmatprep.mubr.f32.mxu1 %v7916_v13  ;;  %v7966_v41 = vand.u32 4294901760, %v702_v39  ;;  %s7806_s23 = smov [#allocation17]  }
  0x74   :  { %v7929_v21 = vsub.f32 %v168_v11, %v7919_v15  ;;  %6932 = vmatpush3.msra.mxu0 %v7906_v4  ;;  %v7933_v22 = vand.u32 4294901760, %v299_v16  ;;  %v7935_v23 = vand.u32 4294901760, %v306_v17  ;;  %v826_v44 = vsub.f32 %v703_v38, %v7961_v40  ;;  %s6573_s24 = sshll.u32 %s7806_s23, 4  ;;  %s6574_s24 = int_to_ptr.vmem [resolvable:$true] %s6573_s24 }
  0x75   :  { %6933 = vmatprep.subr.mxu0 %v7908_v5  ;;  %v287_v24 = vsub.f32 %v285_v12, %v286_v18  ;;  %v7939_v25 = vand.u32 4294901760, %v7926_v19  ;;  %v294_v26 = vsub.f32 %v292_v14, %v293_v20  ;;  %v7972_v45 = vand.u32 4294901760, %v701_v42  ;;  %s7758_s25 = scalar_lea.vmem %s6574_s24, 256  ;;  %p7763_p4 = scmp.lt.s32.totalorder %s6574_s24, %s6574_s24 }
  0x76   :  { %v7942_v27 = vand.u32 4294901760, %v7929_v21  ;;  %6934 = vmatpush3.msra.mxu0 %v7908_v5  ;;  %v301_v28 = vsub.f32 %v299_v16, %v7933_v22  ;;  %v308_v29 = vsub.f32 %v306_v17, %v7935_v23  ;;  %v833_v46 = vsub.f32 %v702_v39, %v7966_v41  ;;  %p7759_p3 = scmp.ne.s32.totalorder %s6574_s24, %s7758_s25  ;;  %p7764_p5 = scmp.lt.s32.totalorder %s7758_s25, %s7758_s25 }
  0x77   :  { %6935 = vmatprep.subr.mxu0 %v7910_v9  ;;  %v288_v30 = vand.u32 4294901760, %v287_v24  ;;  %v242_v31 = vsub.f32 %v7926_v19, %v7939_v25  ;;  %v295_v32 = vand.u32 4294901760, %v294_v26  ;;  %v7978_v47 = vand.u32 4294901760, %v700_v43 }
  0x78   :  { %v252_v33 = vsub.f32 %v7929_v21, %v7942_v27  ;;  %6936 = vmatpush3.msra.mxu0 %v7910_v9  ;;  %v302_v36 = vand.u32 4294901760, %v301_v28  ;;  %v309_v37 = vand.u32 4294901760, %v308_v29  ;;  %v7982_v48 = vand.u32 4294901760, %v826_v44  ;;  %p7765_p6 = por %p7764_p5, %p7763_p4 }
  0x79   :  { %6940 = vmatprep.subr.mxu1 %v288_v30  ;;  %v7953_v34 = vand.u32 4294901760, %v242_v31  ;;  %6951 = vmatprep.subr.mxu0 %v285_v12  ;;  %v840_v49 = vsub.f32 %v701_v42, %v7972_v45  ;;  %v834_v50 = vand.u32 4294901760, %v833_v46  ;;  %v847_v51 = vsub.f32 %v700_v43, %v7978_v47 }
  0x7a   :  { %v7955_v35 = vand.u32 4294901760, %v252_v33  ;;  %6941 = vmatpush3.msra.mxu1 %v288_v30  ;;  %v828_v52 = vsub.f32 %v826_v44, %v7982_v48  ;;  %v8043_v63 = vand.u32 4294901760, %v1242_v62  ;;  %v8046_v2 = vand.u32 4294901760, %v1241_v0  ;;  %p7766_p7 = pnand %p7765_p6, %p7759_p3 }
  0x7b   :  { %6937 = vmatprep.mubr.f32.mxu0 %v7953_v34  ;;  %6942 = vmatprep.subr.mxu1 %v295_v32  ;;  %v841_v53 = vand.u32 4294901760, %v840_v49  ;;  %v835_v54 = vsub.f32 %v833_v46, %v834_v50  ;;  %v848_v55 = vand.u32 4294901760, %v847_v51  ;;  %v1284_v11 = vand.u32 4294901760, %v1239_v7 }
  0x7c   :  { %6938 = vmatmul.mubr.f32.vlgmr.msra.gmra.mxu0 %v7955_v35  ;;  %6943 = vmatpush3.msra.mxu1 %v295_v32  ;;  %v829_v56 = vand.u32 4294901760, %v828_v52  ;;  %v1365_v1 = vsub.f32 %v1242_v62, %v8043_v63  ;;  %vm3869_vm2 = vcmask 130048   ;;  %vm6018_vm3 = vcmask 195584  }
  0x7d   :  { %6952 = vmatpush3.msra.mxu0 %v285_v12  ;;  %6944 = vmatprep.subr.mxu1 %v302_v36  ;;  %v842_v57 = vsub.f32 %v840_v49, %v841_v53  ;;  %v836_v58 = vand.u32 4294901760, %v835_v54  ;;  %v849_v59 = vsub.f32 %v847_v51, %v848_v55 }
  0x7e   :  { %6953 = vmatprep.subr.mxu0 %v292_v14  ;;  %6945 = vmatpush3.msra.mxu1 %v302_v36 }
  0x7f   :  { %6954 = vmatpush3.msra.mxu0 %v292_v14  ;;  %6946 = vmatprep.subr.mxu1 %v309_v37  ;;  %v843_v60 = vand.u32 4294901760, %v842_v57  ;;  %v850_v61 = vand.u32 4294901760, %v849_v59 }
  0x80   :  { %6955 = vmatprep.subr.mxu0 %v299_v16  ;;  %6947 = vmatpush3.msra.mxu1 %v309_v37 }
  0x81   :  { %6956 = vmatpush3.msra.mxu0 %v299_v16  ;;  %6949 = vmatmul.mubr.f32.vlgmr.msra.gmra.mxu1 %v7919_v15 }
  0x82   :  { %6957 = vmatprep.subr.mxu0 %v306_v17  ;;  %6962 = vmatprep.subr.mxu1 %v7904_v3 }
  0x83   :  { %6958 = vmatpush3.msra.mxu0 %v306_v17  ;;  %6959 = vmatprep.mubr.f32.mxu0 %v7926_v19  ;;  %v1386_v17 = vsub.f32 %v1239_v7, %v1284_v11 }
  0x84   :  { %6963 = vmatpush3.msra.mxu1 %v7904_v3  ;;  %6960 = vmatmul.mubr.f32.vlgmr.msra.gmra.mxu0 %v7929_v21 }
  0x85   :  { %6964 = vmatprep.subr.mxu1 %v7906_v4  ;;  %6973 = vmatprep.subr.mxu0 %v286_v18 }
  0x86   :  { %6965 = vmatpush3.msra.mxu1 %v7906_v4  ;;  %6974 = vmatpush3.msra.mxu0 %v286_v18 }
  0x87   :  { %6966 = vmatprep.subr.mxu1 %v7908_v5  ;;  %6975 = vmatprep.subr.mxu0 %v293_v20 }
  0x88   :  { %6967 = vmatpush3.msra.mxu1 %v7908_v5  ;;  %6976 = vmatpush3.msra.mxu0 %v293_v20 }
  0x89   :  { %6968 = vmatprep.subr.mxu1 %v7910_v9  ;;  %6977 = vmatprep.subr.mxu0 %v7933_v22 }
  0x8a   :  { %6969 = vmatpush3.msra.mxu1 %v7910_v9  ;;  %6970 = vmatprep.mubr.f32.mxu1 %v7939_v25 }
  0x8b   :  { %6978 = vmatpush3.msra.mxu0 %v7933_v22  ;;  %6971 = vmatmul.mubr.f32.vlgmr.msra.gmra.mxu1 %v7942_v27  ;;  %v1387_v22 = vand.u32 4294901760, %v1386_v17 }
  0x8c   :  { %6979 = vmatprep.subr.mxu0 %v7935_v23  ;;  %6984 = vmatprep.subr.mxu1 %v7904_v3 }
  0x8d   :  { %6980 = vmatpush3.msra.mxu0 %v7935_v23  ;;  %6981 = vmatprep.mubr.f32.mxu0 %v7916_v13  ;;  %v1388_v24 = vsub.f32 %v1386_v17, %v1387_v22 }
  0x8e   :  { %6985 = vmatpush3.msra.mxu1 %v7904_v3  ;;  %6982 = vmatmul.mubr.f32.vlgmr.msra.gmra.mxu0 %v7919_v15  ;;  %v1240_v3 = vld [vmem:[#allocation11 + $0x8] sm:$0xff] }
  0x8f   :  { %6986 = vmatprep.subr.mxu1 %v7906_v4  ;;  %6995 = vmatprep.subr.mxu0 %v7961_v40  ;;  %v8051_v6 = vand.u32 4294901760, %v1240_v3  ;;  %v1389_v26 = vand.u32 4294901760, %v1388_v24 }
  0x90   :  { %6987 = vmatpush3.msra.mxu1 %v7906_v4  ;;  %6996 = vmatpush3.msra.mxu0 %v7961_v40  ;;  %v1366_v4 = vand.u32 4294901760, %v1365_v1 }
  0x91   :  { %6988 = vmatprep.subr.mxu1 %v7908_v5  ;;  %6997 = vmatprep.subr.mxu0 %v7966_v41  ;;  %v1379_v10 = vsub.f32 %v1240_v3, %v8051_v6 }
  0x92   :  { %6989 = vmatpush3.msra.mxu1 %v7908_v5  ;;  %6998 = vmatpush3.msra.mxu0 %v7966_v41  ;;  %v1372_v5 = vsub.f32 %v1241_v0, %v8046_v2  ;;  %v1367_v8 = vsub.f32 %v1365_v1, %v1366_v4 }
  0x93   :  { %6990 = vmatprep.subr.mxu1 %v7910_v9  ;;  %6999 = vmatprep.subr.mxu0 %v7972_v45  ;;  %v1380_v16 = vand.u32 4294901760, %v1379_v10 }
  0x94   :  { %6991 = vmatpush3.msra.mxu1 %v7910_v9  ;;  %6992 = vmatprep.mubr.f32.mxu1 %v7916_v13  ;;  %v1373_v9 = vand.u32 4294901760, %v1372_v5  ;;  %v1368_v12 = vand.u32 4294901760, %v1367_v8 }
  0x95   :  { %7000 = vmatpush3.msra.mxu0 %v7972_v45  ;;  %6993 = vmatmul.mubr.f32.vlgmr.msra.gmra.mxu1 %v7919_v15  ;;  %v1381_v20 = vsub.f32 %v1379_v10, %v1380_v16 }
  0x96   :  { %7001 = vmatprep.subr.mxu0 %v7978_v47  ;;  %7006 = vmatprep.subr.mxu1 %v829_v56  ;;  %v1374_v14 = vsub.f32 %v1372_v5, %v1373_v9 }
  0x97   :  { %7002 = vmatpush3.msra.mxu0 %v7978_v47  ;;  %7007 = vmatpush3.msra.mxu1 %v829_v56  ;;  %v1382_v23 = vand.u32 4294901760, %v1381_v20 }
  0x98   :  { %7003 = vmatprep.mubr.f32.mxu0 %v7953_v34  ;;  %7008 = vmatprep.subr.mxu1 %v836_v58  ;;  %v1375_v18 = vand.u32 4294901760, %v1374_v14 }
  0x99   :  { %7017 = vmatprep.subr.mxu0 %v826_v44  ;;  %7004 = vmatmul.mubr.f32.vlgmr.msra.gmra.mxu0 %v7955_v35 }
  0x9a   :  { %7009 = vmatpush3.msra.mxu1 %v836_v58  ;;  %7018 = vmatpush3.msra.mxu0 %v826_v44 }
  0x9b   :  { %7010 = vmatprep.subr.mxu1 %v843_v60  ;;  %7019 = vmatprep.subr.mxu0 %v833_v46 }
  0x9c   :  { %7011 = vmatpush3.msra.mxu1 %v843_v60  ;;  %7020 = vmatpush3.msra.mxu0 %v833_v46 }
  0x9d   :  { %7012 = vmatprep.subr.mxu1 %v850_v61  ;;  %7021 = vmatprep.subr.mxu0 %v840_v49 }
  0x9e   :  { %7013 = vmatpush3.msra.mxu1 %v850_v61  ;;  %7014 = vmatprep.mubr.f32.mxu1 %v7916_v13 }
  0x9f   :  { %7022 = vmatpush3.msra.mxu0 %v840_v49  ;;  %7015 = vmatmul.mubr.f32.vlgmr.msra.gmra.mxu1 %v7919_v15 }
  0xa0   :  { %7023 = vmatprep.subr.mxu0 %v847_v51  ;;  %7028 = vmatprep.subr.mxu1 %v7961_v40 }
  0xa1   :  { %7024 = vmatpush3.msra.mxu0 %v847_v51  ;;  %7025 = vmatprep.mubr.f32.mxu0 %v7926_v19 }
  0xa2   :  { %7029 = vmatpush3.msra.mxu1 %v7961_v40  ;;  %7026 = vmatmul.mubr.f32.vlgmr.msra.gmra.mxu0 %v7929_v21 }
  0xa3   :  { %7030 = vmatprep.subr.mxu1 %v7966_v41  ;;  %7039 = vmatprep.subr.mxu0 %v7982_v48 }
  0xa4   :  { %7031 = vmatpush3.msra.mxu1 %v7966_v41  ;;  %7040 = vmatpush3.msra.mxu0 %v7982_v48 }
  0xa5   :  { %7032 = vmatprep.subr.mxu1 %v7972_v45  ;;  %7041 = vmatprep.subr.mxu0 %v834_v50 }
  0xa6   :  { %7033 = vmatpush3.msra.mxu1 %v7972_v45  ;;  %7042 = vmatpush3.msra.mxu0 %v834_v50 }
  0xa7   :  { %7034 = vmatprep.subr.mxu1 %v7978_v47  ;;  %7043 = vmatprep.subr.mxu0 %v841_v53 }
  0xa8   :  { %7035 = vmatpush3.msra.mxu1 %v7978_v47  ;;  %7036 = vmatprep.mubr.f32.mxu1 %v7939_v25 }
  0xa9   :  { %7044 = vmatpush3.msra.mxu0 %v841_v53  ;;  %7037 = vmatmul.mubr.f32.vlgmr.msra.gmra.mxu1 %v7942_v27  ;;  %v6590_v53 = vld [vmem:[#allocation10] ss:$0 sm:$0xff] }
  0xaa   :  { %7045 = vmatprep.subr.mxu0 %v848_v55  ;;  %7050 = vmatprep.subr.mxu1 %v7961_v40 }
  0xab   :  { %7046 = vmatpush3.msra.mxu0 %v848_v55  ;;  %7047 = vmatprep.mubr.f32.mxu0 %v7916_v13 }
  0xac   :  { %7051 = vmatpush3.msra.mxu1 %v7961_v40  ;;  %7048 = vmatmul.mubr.f32.vlgmr.msra.gmra.mxu0 %v7919_v15 }
  0xad   :  { %7052 = vmatprep.subr.mxu1 %v7966_v41  ;;  %7058 = vmatprep.mubr.f32.mxu1 %v7916_v13 }
  0xae   :  { %7053 = vmatpush3.msra.mxu1 %v7966_v41  ;;  %7069 = vmatprep.mubr.f32.mxu0 %v7953_v34 }
  0xaf   :  { %7054 = vmatprep.subr.mxu1 %v7972_v45  ;;  %7061 = vmatprep.subr.mxu0 %v8043_v63 }
  0xb0   :  { %7055 = vmatpush3.msra.mxu1 %v7972_v45  ;;  %7062 = vmatpush3.msra.mxu0 %v8043_v63 }
  0xb1   :  { %7056 = vmatprep.subr.mxu1 %v7978_v47  ;;  %7063 = vmatprep.subr.mxu0 %v8046_v2 }
  0xb2   :  { %7057 = vmatpush3.msra.mxu1 %v7978_v47  ;;  %7064 = vmatpush3.msra.mxu0 %v8046_v2 }
  0xb3   :  { %7059 = vmatmul.mubr.f32.vlgmr.msra.gmra.mxu1 %v7919_v15  ;;  %7065 = vmatprep.subr.mxu0 %v8051_v6 }
  0xb4   :  { %7080 = vmatprep.mubr.f32.mxu1 %v7916_v13  ;;  %7066 = vmatpush3.msra.mxu0 %v8051_v6 }
  0xb5   :  { %7067 = vmatprep.subr.mxu0 %v1284_v11  ;;  %7072 = vmatprep.subr.mxu1 %v1368_v12 }
  0xb6   :  { %7068 = vmatpush3.msra.mxu0 %v1284_v11  ;;  %7073 = vmatpush3.msra.mxu1 %v1368_v12 }
  0xb7   :  { %7083 = vmatprep.subr.mxu0 %v1365_v1  ;;  %7070 = vmatmul.mubr.f32.vlgmr.msra.gmra.mxu0 %v7955_v35 }
  0xb8   :  { %7074 = vmatprep.subr.mxu1 %v1375_v18  ;;  %7084 = vmatpush3.msra.mxu0 %v1365_v1 }
  0xb9   :  { %7075 = vmatpush3.msra.mxu1 %v1375_v18  ;;  %7085 = vmatprep.subr.mxu0 %v1372_v5 }
  0xba   :  { %7076 = vmatprep.subr.mxu1 %v1382_v23  ;;  %7086 = vmatpush3.msra.mxu0 %v1372_v5 }
  0xbb   :  { %7077 = vmatpush3.msra.mxu1 %v1382_v23  ;;  %7087 = vmatprep.subr.mxu0 %v1379_v10 }
  0xbc   :  { %7078 = vmatprep.subr.mxu1 %v1389_v26  ;;  %7088 = vmatpush3.msra.mxu0 %v1379_v10 }
  0xbd   :  { %7079 = vmatpush3.msra.mxu1 %v1389_v26  ;;  %7089 = vmatprep.subr.mxu0 %v1386_v17 }
  0xbe   :  { %7094 = vmatprep.subr.mxu1 %v8043_v63  ;;  %7081 = vmatmul.mubr.f32.vlgmr.msra.gmra.mxu1 %v7919_v15 }
  0xbf   :  { %7095 = vmatpush3.msra.mxu1 %v8043_v63  ;;  %7102 = vmatprep.mubr.f32.mxu1 %v7939_v25 }
  0xc0   :  { %7096 = vmatprep.subr.mxu1 %v8046_v2  ;;  %7090 = vmatpush3.msra.mxu0 %v1386_v17 }
  0xc1   :  { %7097 = vmatpush3.msra.mxu1 %v8046_v2  ;;  %7091 = vmatprep.mubr.f32.mxu0 %v7926_v19 }
  0xc2   :  { %7098 = vmatprep.subr.mxu1 %v8051_v6  ;;  %7105 = vmatprep.subr.mxu0 %v1366_v4 }
  0xc3   :  { %7099 = vmatpush3.msra.mxu1 %v8051_v6  ;;  %7092 = vmatmul.mubr.f32.vlgmr.msra.gmra.mxu0 %v7929_v21  ;;  %v6589_v21 = vld [vmem:[#allocation7] ss:$0 sm:$0xff] }
  0xc4   :  { %7100 = vmatprep.subr.mxu1 %v1284_v11  ;;  %7106 = vmatpush3.msra.mxu0 %v1366_v4 }
  0xc5   :  { %7101 = vmatpush3.msra.mxu1 %v1284_v11  ;;  %7107 = vmatprep.subr.mxu0 %v1373_v9 }
  0xc6   :  { %7116 = vmatprep.subr.mxu1 %v8043_v63  ;;  %7103 = vmatmul.mubr.f32.vlgmr.msra.gmra.mxu1 %v7942_v27 }
  0xc7   :  { %7117 = vmatpush3.msra.mxu1 %v8043_v63  ;;  %7124 = vmatprep.mubr.f32.mxu1 %v7916_v13 }
  0xc8   :  { %7118 = vmatprep.subr.mxu1 %v8046_v2  ;;  %7108 = vmatpush3.msra.mxu0 %v1373_v9 }
  0xc9   :  { %7119 = vmatpush3.msra.mxu1 %v8046_v2  ;;  %7109 = vmatprep.subr.mxu0 %v1380_v16 }
  0xca   :  { %7120 = vmatprep.subr.mxu1 %v8051_v6  ;;  %7110 = vmatpush3.msra.mxu0 %v1380_v16 }
  0xcb   :  { %7121 = vmatpush3.msra.mxu1 %v8051_v6  ;;  %7111 = vmatprep.subr.mxu0 %v1387_v22 }
  0xcc   :  { %7122 = vmatprep.subr.mxu1 %v1284_v11  ;;  %7112 = vmatpush3.msra.mxu0 %v1387_v22 }
  0xcd   :  { %7123 = vmatpush3.msra.mxu1 %v1284_v11  ;;  %7113 = vmatprep.mubr.f32.mxu0 %v7916_v13 }
  0xce   :  { %7125 = vmatmul.mubr.f32.vlgmr.msra.gmra.mxu1 %v7919_v15  ;;  %7114 = vmatmul.mubr.f32.vlgmr.msra.gmra.mxu0 %v7919_v15 }
 0x13c   :  { %v6939_v19 = vpop.f32.mrf.mxu0 }
 0x13d   :  { %v256_v31 = vadd.f32 %v6939_v19, %v6589_v21 }
 0x13e   :  { %v245_v25 = vpop.f32.mrf.mxu0 }
 0x13f   :  { %v246_v28 = vadd.f32 %v6589_v21, %v245_v25 }
 0x141   :  { %v6950_v27 = vpop.f32.mrf.mxu1 }
 0x142   :  { %v353_v35 = vadd.f32 %v6950_v27, %v256_v31 }
 0x143   :  { %v346_v29 = vpop.f32.mrf.mxu1 }
 0x144   :  { %v6961_v30 = vpop.f32.mrf.mxu0  ;;  %v347_v33 = vadd.f32 %v346_v29, %v246_v28 }
 0x145   :  { %v440_v13 = vadd.f32 %v6961_v30, %v353_v35 }
 0x146   :  { %v432_v34 = vpop.f32.mrf.mxu0 }
 0x147   :  { %v433_v38 = vadd.f32 %v432_v34, %v347_v33 }
 0x14b   :  { %v6972_v32 = vpop.f32.mrf.mxu1 }
 0x14c   :  { %v525_v41 = vadd.f32 %v6972_v32, %v440_v13 }
 0x14d   :  { %v516_v36 = vpop.f32.mrf.mxu1 }
 0x14e   :  { %v6983_v37 = vpop.f32.mrf.mxu0  ;;  %v517_v39 = vadd.f32 %v516_v36, %v433_v38 }
 0x14f   :  { %v614_v44 = vadd.f32 %v6983_v37, %v525_v41 }
 0x150   :  { %v607_v40 = vpop.f32.mrf.mxu0 }
 0x151   :  { %v608_v42 = vadd.f32 %v607_v40, %v517_v39 }
 0x155   :  { %v6994_v15 = vpop.f32.mrf.mxu1 }
 0x156   :  { %v695_v46 = vadd.f32 %v6994_v15, %v614_v44 }
 0x157   :  { %v688_v43 = vpop.f32.mrf.mxu1 }
 0x158   :  { %v689_v45 = vadd.f32 %v688_v43, %v608_v42  ;;  %v8088_v50 = vmul.f32 0.35355338, %v695_v46 }
 0x159   :  { %v7005_v51 = vpop.f32.mrf.mxu0 }
 0x15a   :  { %v8080_v47 = vmul.f32 0.35355338, %v689_v45  ;;  %v797_v58 = vadd.f32 %v7005_v51, %v6590_v53  ;;  %v1831_v3 = vsel %vm1828_vm1, %v8088_v50, 0 }
 0x15b   :  { %v786_v55 = vpop.f32.mrf.mxu0  ;;  %v8102_v9 = vand.u32 4294901760, %v1831_v3 }
 0x15c   :  { %1780 = vrot.lane.b32.xlu1 %v8080_v47, %s7801_s6  ;;  %v1829_v48 = vsel %vm1828_vm1, %v8080_v47, 0  ;;  %v787_v60 = vadd.f32 %v6590_v53, %v786_v55 }
 0x15d   :  { %v8086_v49 = vand.u32 4294901760, %v1829_v48  ;;  %v1915_v14 = vsub.f32 %v1831_v3, %v8102_v9 }
 0x15f   :  { %7138 = vmatprep.mubr.f32.mxu1 %v8086_v49  ;;  %v8092_v52 = vsub.f32 %v1829_v48, %v8086_v49  ;;  %v7016_v56 = vpop.f32.mrf.mxu1  ;;  %v1916_v26 = vand.u32 4294901760, %v1915_v14 }
 0x160   :  { %1782 = vrot.lane.b32.xlu1 %v8088_v50, %s7801_s6  ;;  %v894_v63 = vadd.f32 %v7016_v56, %v797_v58 }
 0x161   :  { %v1906_v54 = vand.u32 4294901760, %v8092_v52  ;;  %v887_v61 = vpop.f32.mrf.mxu1  ;;  %v1917_v28 = vsub.f32 %v1915_v14, %v1916_v26 }
 0x162   :  { %v7027_v62 = vpop.f32.mrf.mxu0  ;;  %v888_v1 = vadd.f32 %v887_v61, %v787_v60 }
 0x163   :  { %v1907_v57 = vsub.f32 %v8092_v52, %v1906_v54  ;;  %v981_v4 = vadd.f32 %v7027_v62, %v894_v63  ;;  %v1918_v32 = vand.u32 4294901760, %v1917_v28 }
 0x164   :  { %v973_v2 = vpop.f32.mrf.mxu0 }
 0x165   :  { %v1908_v59 = vand.u32 4294901760, %v1907_v57  ;;  %v974_v7 = vadd.f32 %v973_v2, %v888_v1 }
 0x167   :  { %7131 = vmatprep.mubr.f32.mxu0 %v1908_v59 }
 0x169   :  { %v7038_v0 = vpop.f32.mrf.mxu1 }
 0x16a   :  { %v1066_v8 = vadd.f32 %v7038_v0, %v981_v4 }
 0x16b   :  { %v1057_v5 = vpop.f32.mrf.mxu1 }
 0x16c   :  { %v7049_v6 = vpop.f32.mrf.mxu0  ;;  %v1058_v10 = vadd.f32 %v1057_v5, %v974_v7 }
 0x16d   :  { %v1155_v12 = vadd.f32 %v7049_v6, %v1066_v8 }
 0x16e   :  { %v1148_v11 = vpop.f32.mrf.mxu0 }
 0x16f   :  { %v1149_v17 = vadd.f32 %v1148_v11, %v1058_v10 }
 0x173   :  { %v7060_v16 = vpop.f32.mrf.mxu1 }
 0x174   :  { %v1236_v18 = vadd.f32 %v7060_v16, %v1155_v12 }
 0x175   :  { %v1229_v20 = vpop.f32.mrf.mxu1 }
 0x176   :  { %v1835_v22 = vsel %vm1828_vm1, %v1236_v18, 0  ;;  %v1230_v23 = vadd.f32 %v1229_v20, %v1149_v17  ;;  %1796 = vrot.lane.b32.xlu0 %v1236_v18, %s7801_s6 }
 0x177   :  { %v1866_v24 = vand.u32 4294901760, %v1835_v22 }
 0x178   :  { %v1833_v19 = vsel %vm1828_vm1, %v1230_v23, 0  ;;  %1798 = vrot.lane.b32.xlu1 %v1230_v23, %s7802_s8 }
 0x179   :  { %v1869_v21 = vand.u32 4294901760, %v1833_v19  ;;  %7127 = vmatprep.subr.mxu0 %v1866_v24  ;;  %v1954_v25 = vsub.f32 %v1835_v22, %v1866_v24 }
 0x17a   :  { %7128 = vmatpush3.xpose.msra.mxu0 %v1866_v24  ;;  %1794 = vrot.lane.b32.xlu0 %v1230_v23, %s7801_s6 }
 0x17b   :  { %v1961_v27 = vsub.f32 %v1833_v19, %v1869_v21  ;;  %7129 = vmatprep.subr.mxu0 %v1869_v21  ;;  %v1955_v29 = vand.u32 4294901760, %v1954_v25 }
 0x17c   :  { %1786 = vrot.lane.b32.xlu1 %v8088_v50, %s7802_s8 }
 0x17d   :  { %v1956_v30 = vsub.f32 %v1954_v25, %v1955_v29  ;;  %v1962_v31 = vand.u32 4294901760, %v1961_v27 }
 0x17e   :  { %1800 = vrot.lane.b32.xlu0 %v1236_v18, %s7802_s8  ;;  %7130 = vmatpush3.xpose.msra.mxu0 %v1869_v21 }
 0x17f   :  { %7141 = vmatprep.subr.mxu0 %v1954_v25  ;;  %v1957_v33 = vand.u32 4294901760, %v1956_v30  ;;  %v1963_v34 = vsub.f32 %v1961_v27, %v1962_v31 }
 0x180   :  { %1802 = vrot.lane.b32.xlu1 %v1230_v23, %s7803_s5 }
 0x181   :  { %7132 = vmatmul.mubr.f32.vlgmr.msra.gmra.mxu0 %v1918_v32  ;;  %7134 = vmatprep.subr.mxu1 %v1957_v33  ;;  %v1964_v35 = vand.u32 4294901760, %v1963_v34  ;;  %v6591_v32 = vld [vmem:[#allocation13] ss:$0 sm:$0xff] }
 0x182   :  { %7135 = vmatpush3.xpose.msra.mxu1 %v1957_v33  ;;  %1784 = vrot.lane.b32.xlu0 %v8080_v47, %s7802_s8 }
 0x183   :  { %7142 = vmatpush3.xpose.msra.mxu0 %v1954_v25  ;;  %7145 = vmatprep.mubr.f32.mxu0 %v8092_v52 }
 0x184   :  { %7136 = vmatprep.subr.mxu1 %v1964_v35  ;;  %7143 = vmatprep.subr.mxu0 %v1961_v27 }
 0x185   :  { %1790 = vrot.lane.b32.xlu1 %v8088_v50, %s7803_s5 }
 0x186   :  { %7137 = vmatpush3.xpose.msra.mxu1 %v1964_v35  ;;  %1804 = vrot.lane.b32.xlu0 %v1236_v18, %s7803_s5 }
 0x187   :  { %7144 = vmatpush3.xpose.msra.mxu0 %v1961_v27  ;;  %7148 = vmatprep.subr.mxu1 %v1866_v24 }
 0x188   :  { %7155 = vmatprep.subr.mxu0 %v1955_v29 }
 0x189   :  { %7139 = vmatmul.mubr.f32.vlgmr.msra.gmra.mxu1 %v8102_v9 }
 0x18a   :  { %7146 = vmatmul.mubr.f32.vlgmr.msra.gmra.mxu0 %v1915_v14  ;;  %1788 = vrot.lane.b32.xlu0 %v8080_v47, %s7803_s5 }
 0x18b   :  { %7149 = vmatpush3.xpose.msra.mxu1 %v1866_v24  ;;  %7152 = vmatprep.mubr.f32.mxu1 %v1906_v54 }
 0x18c   :  { %7156 = vmatpush3.xpose.msra.mxu0 %v1955_v29  ;;  %7159 = vmatprep.mubr.f32.mxu0 %v8086_v49 }
 0x18d   :  { %7150 = vmatprep.subr.mxu1 %v1869_v21  ;;  %7157 = vmatprep.subr.mxu0 %v1962_v31 }
 0x18f   :  { %7151 = vmatpush3.xpose.msra.mxu1 %v1869_v21 }
 0x190   :  { %7158 = vmatpush3.xpose.msra.mxu0 %v1962_v31  ;;  %7162 = vmatprep.subr.mxu1 %v1866_v24  ;;  %v7071_v31 = vpop.f32.mrf.mxu0 }
 0x192   :  { %7153 = vmatmul.mubr.f32.vlgmr.msra.gmra.mxu1 %v1916_v26 }
 0x193   :  { %7160 = vmatmul.mubr.f32.vlgmr.msra.gmra.mxu0 %v8102_v9  ;;  %7163 = vmatpush3.xpose.msra.mxu1 %v1866_v24 }
 0x194   :  { %7166 = vmatprep.mubr.f32.mxu1 %v8086_v49  ;;  %7164 = vmatprep.subr.mxu1 %v1869_v21 }
 0x197   :  { %7165 = vmatpush3.xpose.msra.mxu1 %v1869_v21 }
 0x19a   :  { %7167 = vmatmul.mubr.f32.vlgmr.msra.gmra.mxu1 %v8102_v9 }
 0x1ce   :  { %v1781_v36 = vpop.permute.xlu1 %1780 }
 0x1cf   :  { %v2339_v37 = vsel %vm1828_vm1, %v1781_v36, 0 }
 0x1d0   :  { %v8130_v38 = vand.u32 4294901760, %v2339_v37 }
 0x1d2   :  { %v2415_v13 = vsub.f32 %v2339_v37, %v8130_v38  ;;  %7180 = vmatprep.mubr.f32.mxu1 %v8130_v38  ;;  %v1783_v15 = vpop.permute.xlu1 %1782  ;;  %v1336_v37 = vadd.f32 %v7071_v31, %v6591_v32  ;;  %v8324_v31 = vld [vmem:[%s8617_s9] sm:$0xff] }
 0x1d3   :  { %v2341_v42 = vsel %vm1828_vm1, %v1783_v15, 0 }
 0x1d4   :  { %v2416_v39 = vand.u32 4294901760, %v2415_v13  ;;  %v8135_v43 = vand.u32 4294901760, %v2341_v42 }
 0x1d6   :  { %v2417_v40 = vsub.f32 %v2415_v13, %v2416_v39  ;;  %v8138_v44 = vsub.f32 %v2341_v42, %v8135_v43 }
 0x1d8   :  { %v2418_v41 = vand.u32 4294901760, %v2417_v40  ;;  %v2426_v47 = vand.u32 4294901760, %v8138_v44 }
 0x1da   :  { %7173 = vmatprep.mubr.f32.mxu0 %v2418_v41  ;;  %v2427_v52 = vsub.f32 %v8138_v44, %v2426_v47 }
 0x1dc   :  { %v2428_v59 = vand.u32 4294901760, %v2427_v52 }
 0x1e8   :  { %v1797_v45 = vpop.permute.xlu0 %1796 }
 0x1e9   :  { %v2345_v46 = vsel %vm1828_vm1, %v1797_v45, 0 }
 0x1ea   :  { %v8142_v48 = vand.u32 4294901760, %v2345_v46  ;;  %v1799_v55 = vpop.permute.xlu1 %1798 }
 0x1eb   :  { %v2853_v8 = vsel %vm1828_vm1, %v1799_v55, 0 }
 0x1ec   :  { %v2464_v49 = vsub.f32 %v2345_v46, %v8142_v48  ;;  %v1795_v50 = vpop.permute.xlu0 %1794  ;;  %7169 = vmatprep.subr.mxu0 %v8142_v48  ;;  %v8173_v11 = vand.u32 4294901760, %v2853_v8 }
 0x1ed   :  { %v2343_v51 = vsel %vm1828_vm1, %v1795_v50, 0  ;;  %7170 = vmatpush3.xpose.msra.mxu0 %v8142_v48 }
 0x1ee   :  { %v8151_v53 = vand.u32 4294901760, %v2343_v51  ;;  %v2465_v54 = vand.u32 4294901760, %v2464_v49  ;;  %v1787_v0 = vpop.permute.xlu1 %1786  ;;  %v2981_v17 = vsub.f32 %v2853_v8, %v8173_v11 }
 0x1ef   :  { %v2851_v5 = vsel %vm1828_vm1, %v1787_v0, 0 }
 0x1f0   :  { %v2471_v56 = vsub.f32 %v2343_v51, %v8151_v53  ;;  %v1801_v57 = vpop.permute.xlu0 %1800  ;;  %7171 = vmatprep.subr.mxu0 %v8151_v53  ;;  %v2466_v58 = vsub.f32 %v2464_v49, %v2465_v54  ;;  %v8168_v9 = vand.u32 4294901760, %v2851_v5  ;;  %v8197_v26 = vand.u32 4294901760, %v2981_v17 }
 0x1f1   :  { %7172 = vmatpush3.xpose.msra.mxu0 %v8151_v53  ;;  %v2855_v1 = vsel %vm1828_vm1, %v1801_v57, 0 }
 0x1f2   :  { %7183 = vmatprep.subr.mxu0 %v2464_v49  ;;  %v2467_v60 = vand.u32 4294901760, %v2466_v58  ;;  %v2472_v61 = vand.u32 4294901760, %v2471_v56  ;;  %v8161_v6 = vand.u32 4294901760, %v2855_v1  ;;  %v8179_v14 = vsub.f32 %v2851_v5, %v8168_v9  ;;  %v1803_v21 = vpop.permute.xlu1 %1802 }
 0x1f3   :  { %v2983_v28 = vsub.f32 %v2981_v17, %v8197_v26  ;;  %v3363_v15 = vsel %vm1828_vm1, %v1803_v21, 0 }
 0x1f4   :  { %v1785_v62 = vpop.permute.xlu0 %1784  ;;  %7174 = vmatmul.mubr.f32.vlgmr.msra.gmra.mxu0 %v2428_v59  ;;  %7176 = vmatprep.subr.mxu1 %v2467_v60  ;;  %v2473_v63 = vsub.f32 %v2471_v56, %v2472_v61  ;;  %v2974_v10 = vsub.f32 %v2855_v1, %v8161_v6  ;;  %v2936_v22 = vand.u32 4294901760, %v8179_v14 }
 0x1f5   :  { %v2849_v2 = vsel %vm1828_vm1, %v1785_v62, 0  ;;  %7177 = vmatpush3.xpose.msra.mxu1 %v2467_v60  ;;  %7184 = vmatpush3.xpose.msra.mxu0 %v2464_v49  ;;  %v2984_v36 = vand.u32 4294901760, %v2983_v28  ;;  %v8319_v28 = vld [vmem:[%s8617_s9 + $0x8] sm:$0xff]  ;;  %s7804_s9 = smov 16  }
 0x1f6   :  { %v8158_v3 = vand.u32 4294901760, %v2849_v2  ;;  %7187 = vmatprep.mubr.f32.mxu0 %v2415_v13  ;;  %7185 = vmatprep.subr.mxu0 %v2471_v56  ;;  %v2474_v4 = vand.u32 4294901760, %v2473_v63  ;;  %v8182_v16 = vand.u32 4294901760, %v2974_v10  ;;  %v2937_v19 = vsub.f32 %v8179_v14, %v2936_v22  ;;  %v7082_v13 = vpop.f32.mrf.mxu1 }
 0x1f7   :  { %v1791_v33 = vpop.permute.xlu1 %1790 }
 0x1f8   :  { %7178 = vmatprep.subr.mxu1 %v2474_v4  ;;  %v8164_v7 = vsub.f32 %v2849_v2, %v8158_v3  ;;  %v1805_v18 = vpop.permute.xlu0 %1804  ;;  %v2976_v23 = vsub.f32 %v2974_v10, %v8182_v16  ;;  %v2938_v30 = vand.u32 4294901760, %v2937_v19  ;;  %v1426_v45 = vpop.f32.mrf.mxu1 }
 0x1f9   :  { %7179 = vmatpush3.xpose.msra.mxu1 %v2474_v4  ;;  %7186 = vmatpush3.xpose.msra.mxu0 %v2471_v56  ;;  %v3365_v34 = vsel %vm1828_vm1, %v1805_v18, 0 }
 0x1fa   :  { %7190 = vmatprep.subr.mxu1 %v8142_v48  ;;  %7197 = vmatprep.subr.mxu0 %v2465_v54  ;;  %v2926_v12 = vand.u32 4294901760, %v8164_v7  ;;  %v2977_v27 = vand.u32 4294901760, %v2976_v23  ;;  %v8217_v40 = vand.u32 4294901760, %v3365_v34 }
 0x1fc   :  { %7181 = vmatmul.mubr.f32.vlgmr.msra.gmra.mxu1 %v8135_v43  ;;  %7188 = vmatmul.mubr.f32.vlgmr.msra.gmra.mxu0 %v8138_v44  ;;  %v2927_v20 = vsub.f32 %v8164_v7, %v2926_v12  ;;  %v1789_v25 = vpop.permute.xlu0 %1788 }
 0x1fd   :  { %7191 = vmatpush3.xpose.msra.mxu1 %v8142_v48  ;;  %7194 = vmatprep.mubr.f32.mxu1 %v2416_v39  ;;  %v3359_v29 = vsel %vm1828_vm1, %v1789_v25, 0  ;;  %v3361_v39 = vsel %vm1828_vm1, %v1791_v33, 0 }
 0x1fe   :  { %7198 = vmatpush3.xpose.msra.mxu0 %v2465_v54  ;;  %7201 = vmatprep.mubr.f32.mxu0 %v8130_v38  ;;  %v2928_v24 = vand.u32 4294901760, %v2927_v20  ;;  %v8212_v35 = vand.u32 4294901760, %v3359_v29  ;;  %v8224_v44 = vand.u32 4294901760, %v3361_v39  ;;  %v7104_v54 = vpop.f32.mrf.mxu1 }
 0x1ff   :  { %7192 = vmatprep.subr.mxu1 %v8151_v53  ;;  %7199 = vmatprep.subr.mxu0 %v2472_v61 }
 0x200   :  { %v8220_v41 = vsub.f32 %v3359_v29, %v8212_v35  ;;  %v8238_v52 = vsub.f32 %v3361_v39, %v8224_v44 }
 0x201   :  { %7193 = vmatpush3.xpose.msra.mxu1 %v8151_v53 }
 0x202   :  { %7200 = vmatpush3.xpose.msra.mxu0 %v2472_v61  ;;  %7204 = vmatprep.subr.mxu1 %v8142_v48  ;;  %v3436_v49 = vand.u32 4294901760, %v8220_v41  ;;  %v3446_v60 = vand.u32 4294901760, %v8238_v52  ;;  %v1596_v61 = vpop.f32.mrf.mxu1 }
 0x203   :  { %7211 = vmatprep.subr.mxu0 %v8161_v6 }
 0x204   :  { %7195 = vmatmul.mubr.f32.vlgmr.msra.gmra.mxu1 %v2426_v47  ;;  %v3484_v47 = vsub.f32 %v3365_v34, %v8217_v40  ;;  %v3437_v57 = vsub.f32 %v8220_v41, %v3436_v49  ;;  %v3447_v5 = vsub.f32 %v8238_v52, %v3446_v60  ;;  %v7126_v8 = vpop.f32.mrf.mxu1 }
 0x205   :  { %7202 = vmatmul.mubr.f32.vlgmr.msra.gmra.mxu0 %v8135_v43  ;;  %7205 = vmatpush3.xpose.msra.mxu1 %v8142_v48  ;;  %v8229_v48 = vand.u32 4294901760, %v3363_v15 }
 0x206   :  { %7208 = vmatprep.mubr.f32.mxu1 %v8130_v38  ;;  %7212 = vmatpush3.xpose.msra.mxu0 %v8161_v6  ;;  %v1325_v38 = vpop.f32.mrf.mxu0  ;;  %v3485_v55 = vand.u32 4294901760, %v3484_v47  ;;  %v3438_v0 = vand.u32 4294901760, %v3437_v57 }
 0x207   :  { %7215 = vmatprep.mubr.f32.mxu0 %v2928_v24  ;;  %7206 = vmatprep.subr.mxu1 %v8151_v53  ;;  %v1326_v42 = vadd.f32 %v6591_v32, %v1325_v38  ;;  %v3491_v56 = vsub.f32 %v3363_v15, %v8229_v48 }
 0x208   :  { %7213 = vmatprep.subr.mxu0 %v8173_v11  ;;  %v7093_v46 = vpop.f32.mrf.mxu0  ;;  %v3486_v63 = vsub.f32 %v3484_v47, %v3485_v55 }
 0x209   :  { %7207 = vmatpush3.xpose.msra.mxu1 %v8151_v53  ;;  %v1427_v50 = vadd.f32 %v1426_v45, %v1326_v42  ;;  %v3492_v1 = vand.u32 4294901760, %v3491_v56 }
 0x20a   :  { %7214 = vmatpush3.xpose.msra.mxu0 %v8173_v11  ;;  %7218 = vmatprep.subr.mxu1 %v2977_v27  ;;  %v1512_v53 = vpop.f32.mrf.mxu0 }
 0x20b   :  { %7225 = vmatprep.subr.mxu0 %v2974_v10  ;;  %v1513_v58 = vadd.f32 %v1512_v53, %v1427_v50 }
 0x20c   :  { %7209 = vmatmul.mubr.f32.vlgmr.msra.gmra.mxu1 %v8135_v43  ;;  %v1433_v43 = vadd.f32 %v7082_v13, %v1336_v37  ;;  %v7115_v62 = vpop.f32.mrf.mxu0 }
 0x20d   :  { %7216 = vmatmul.mubr.f32.vlgmr.msra.gmra.mxu0 %v2938_v30  ;;  %7219 = vmatpush3.xpose.msra.mxu1 %v2977_v27  ;;  %v1597_v2 = vadd.f32 %v1596_v61, %v1513_v58 }
 0x20e   :  { %7222 = vmatprep.mubr.f32.mxu1 %v8158_v3  ;;  %7226 = vmatpush3.xpose.msra.mxu0 %v2974_v10  ;;  %v1520_v51 = vadd.f32 %v7093_v46, %v1433_v43  ;;  %v3487_v10 = vand.u32 4294901760, %v3486_v63 }
 0x20f   :  { %7229 = vmatprep.mubr.f32.mxu0 %v8164_v7  ;;  %7220 = vmatprep.subr.mxu1 %v2984_v36  ;;  %v1687_v7 = vpop.f32.mrf.mxu0 }
 0x210   :  { %7227 = vmatprep.subr.mxu0 %v2981_v17  ;;  %v1605_v59 = vadd.f32 %v7104_v54, %v1520_v51 }
 0x211   :  { %7221 = vmatpush3.xpose.msra.mxu1 %v2984_v36 }
 0x212   :  { %7228 = vmatpush3.xpose.msra.mxu0 %v2981_v17  ;;  %7232 = vmatprep.subr.mxu1 %v8161_v6  ;;  %v1694_v4 = vadd.f32 %v7115_v62, %v1605_v59 }
 0x213   :  { %7239 = vmatprep.subr.mxu0 %v8182_v16 }
 0x214   :  { %7223 = vmatmul.mubr.f32.vlgmr.msra.gmra.mxu1 %v8168_v9 }
 0x215   :  { %7230 = vmatmul.mubr.f32.vlgmr.msra.gmra.mxu0 %v8179_v14  ;;  %7233 = vmatpush3.xpose.msra.mxu1 %v8161_v6  ;;  %v3448_v14 = vand.u32 4294901760, %v3447_v5 }
 0x216   :  { %7236 = vmatprep.mubr.f32.mxu1 %v2926_v12  ;;  %7240 = vmatpush3.xpose.msra.mxu0 %v8182_v16  ;;  %v8263_v12 = vadd.f32 %v7126_v8, %v1694_v4  ;;  %v1768_v16 = vpop.f32.mrf.mxu1 }
 0x217   :  { %7243 = vmatprep.mubr.f32.mxu0 %v8158_v3  ;;  %7234 = vmatprep.subr.mxu1 %v8173_v11 }
 0x218   :  { %7241 = vmatprep.subr.mxu0 %v8197_v26 }
 0x219   :  { %7235 = vmatpush3.xpose.msra.mxu1 %v8173_v11 }
 0x21a   :  { %7242 = vmatpush3.xpose.msra.mxu0 %v8197_v26  ;;  %7246 = vmatprep.subr.mxu1 %v8161_v6 }
 0x21b   :  { %7253 = vmatprep.subr.mxu0 %v8217_v40 }
 0x21c   :  { %7237 = vmatmul.mubr.f32.vlgmr.msra.gmra.mxu1 %v2936_v22 }
 0x21d   :  { %7244 = vmatmul.mubr.f32.vlgmr.msra.gmra.mxu0 %v8168_v9  ;;  %7247 = vmatpush3.xpose.msra.mxu1 %v8161_v6  ;;  %v3493_v6 = vsub.f32 %v3491_v56, %v3492_v1 }
 0x21e   :  { %7250 = vmatprep.mubr.f32.mxu1 %v8158_v3  ;;  %7254 = vmatpush3.xpose.msra.mxu0 %v8217_v40  ;;  %v1688_v3 = vadd.f32 %v1687_v7, %v1597_v2 }
 0x21f   :  { %7257 = vmatprep.mubr.f32.mxu0 %v3438_v0  ;;  %7248 = vmatprep.subr.mxu1 %v8173_v11  ;;  %v3494_v17 = vand.u32 4294901760, %v3493_v6 }
 0x220   :  { %7255 = vmatprep.subr.mxu0 %v8229_v48  ;;  %v8270_v18 = vadd.f32 %v1768_v16, %v1688_v3 }
 0x221   :  { %7249 = vmatpush3.xpose.msra.mxu1 %v8173_v11  ;;  %v8268_v11 = vand.u32 4294901760, %v8263_v12 }
 0x222   :  { %7256 = vmatpush3.xpose.msra.mxu0 %v8229_v48  ;;  %7260 = vmatprep.subr.mxu1 %v3487_v10 }
 0x223   :  { %7267 = vmatprep.subr.mxu0 %v3484_v47  ;;  %v8279_v20 = vsub.f32 %v8263_v12, %v8268_v11 }
 0x224   :  { %7251 = vmatmul.mubr.f32.vlgmr.msra.gmra.mxu1 %v8168_v9  ;;  %v8275_v9 = vand.u32 4294901760, %v8270_v18 }
 0x225   :  { %7258 = vmatmul.mubr.f32.vlgmr.msra.gmra.mxu0 %v3448_v14  ;;  %7261 = vmatpush3.xpose.msra.mxu1 %v3487_v10  ;;  %v8287_v22 = vand.u32 4294901760, %v8279_v20 }
 0x226   :  { %7264 = vmatprep.mubr.f32.mxu1 %v8212_v35  ;;  %7268 = vmatpush3.xpose.msra.mxu0 %v3484_v47  ;;  %v8291_v23 = vsub.f32 %v8270_v18, %v8275_v9 }
 0x227   :  { %7271 = vmatprep.mubr.f32.mxu0 %v8220_v41  ;;  %7262 = vmatprep.subr.mxu1 %v3494_v17  ;;  %v4083_v24 = vsub.f32 %v8279_v20, %v8287_v22 }
 0x228   :  { %7269 = vmatprep.subr.mxu0 %v3491_v56  ;;  %v8300_v26 = vand.u32 4294901760, %v8291_v23 }
 0x229   :  { %7263 = vmatpush3.xpose.msra.mxu1 %v3494_v17  ;;  %v4084_v19 = vand.u32 4294901760, %v4083_v24 }
 0x22a   :  { %7270 = vmatpush3.xpose.msra.mxu0 %v3491_v56  ;;  %7274 = vmatprep.subr.mxu1 %v8217_v40  ;;  %v4090_v21 = vsub.f32 %v8291_v23, %v8300_v26 }
 0x22b   :  { %7281 = vmatprep.subr.mxu0 %v3485_v55 }
 0x22c   :  { %7265 = vmatmul.mubr.f32.vlgmr.msra.gmra.mxu1 %v8224_v44  ;;  %v4091_v25 = vand.u32 4294901760, %v4090_v21 }
 0x22d   :  { %7272 = vmatmul.mubr.f32.vlgmr.msra.gmra.mxu0 %v8238_v52  ;;  %7275 = vmatpush3.xpose.msra.mxu1 %v8217_v40 }
 0x22e   :  { %7278 = vmatprep.mubr.f32.mxu1 %v3436_v49  ;;  %7282 = vmatpush3.xpose.msra.mxu0 %v3485_v55 }
 0x22f   :  { %7285 = vmatprep.mubr.f32.mxu0 %v8212_v35  ;;  %7276 = vmatprep.subr.mxu1 %v8229_v48 }
 0x230   :  { %7283 = vmatprep.subr.mxu0 %v3492_v1 }
 0x231   :  { %7277 = vmatpush3.xpose.msra.mxu1 %v8229_v48 }
 0x232   :  { %7284 = vmatpush3.xpose.msra.mxu0 %v3492_v1  ;;  %7288 = vmatprep.subr.mxu1 %v8217_v40 }
 0x233   :  { %7295 = vmatprep.subr.mxu0 %v8268_v11 }
 0x234   :  { %7279 = vmatmul.mubr.f32.vlgmr.msra.gmra.mxu1 %v3446_v60 }
 0x235   :  { %7286 = vmatmul.mubr.f32.vlgmr.msra.gmra.mxu0 %v8224_v44  ;;  %7289 = vmatpush3.xpose.msra.mxu1 %v8217_v40 }
 0x236   :  { %7292 = vmatprep.mubr.f32.mxu1 %v8212_v35  ;;  %7290 = vmatprep.subr.mxu1 %v8229_v48 }
 0x237   :  { %7296 = vmatpush3.msra.mxu0 %v8268_v11 }
 0x238   :  { %7297 = vmatprep.subr.mxu0 %v8275_v9 }
 0x239   :  { %7291 = vmatpush3.xpose.msra.mxu1 %v8229_v48  ;;  %7298 = vmatpush3.msra.mxu0 %v8275_v9 }
 0x23a   :  { %7302 = vmatprep.subr.mxu1 %v4084_v19  ;;  %7309 = vmatprep.subr.mxu0 %v8279_v20 }
 0x23c   :  { %7293 = vmatmul.mubr.f32.vlgmr.msra.gmra.mxu1 %v8224_v44 }
 0x23d   :  { %7303 = vmatpush3.msra.mxu1 %v4084_v19 }
 0x23e   :  { %7304 = vmatprep.subr.mxu1 %v4091_v25 }
 0x23f   :  { %7305 = vmatpush3.msra.mxu1 %v4091_v25 }
 0x240   :  { %7316 = vmatprep.subr.mxu1 %v8268_v11 }
 0x241   :  { %v7133_v27 = vpop.f32.mrf.mxu0 }
 0x242   :  { %v1921_v32 = vadd.f32 %v7133_v27, %v8319_v28 }
 0x243   :  { %v1910_v30 = vpop.f32.mrf.mxu0 }
 0x244   :  { %v1911_v34 = vadd.f32 %v1910_v30, %v8324_v31 }
 0x249   :  { %v7140_v29 = vpop.f32.mrf.mxu1 }
 0x24a   :  { %v2008_v35 = vadd.f32 %v7140_v29, %v1921_v32  ;;  %v7147_v36 = vpop.f32.mrf.mxu0 }
 0x24b   :  { %v2001_v33 = vpop.f32.mrf.mxu1 }
 0x24c   :  { %v2002_v37 = vadd.f32 %v2001_v33, %v1911_v34  ;;  %v2091_v13 = vadd.f32 %v7147_v36, %v2008_v35  ;;  %v2083_v39 = vpop.f32.mrf.mxu0 }
 0x24e   :  { %v2084_v41 = vadd.f32 %v2083_v39, %v2002_v37 }
 0x252   :  { %v7154_v38 = vpop.f32.mrf.mxu1 }
 0x253   :  { %v2174_v15 = vadd.f32 %v7154_v38, %v2091_v13  ;;  %v7161_v42 = vpop.f32.mrf.mxu0 }
 0x254   :  { %v2165_v40 = vpop.f32.mrf.mxu1 }
 0x255   :  { %v2166_v43 = vadd.f32 %v2165_v40, %v2084_v41  ;;  %v2257_v44 = vadd.f32 %v7161_v42, %v2174_v15  ;;  %v2250_v45 = vpop.f32.mrf.mxu0 }
 0x257   :  { %v2251_v47 = vadd.f32 %v2250_v45, %v2166_v43 }
 0x25a   :  { %v7168_v46 = vpop.f32.mrf.mxu1 }
 0x25b   :  { %v8328_v48 = vadd.f32 %v7168_v46, %v2257_v44 }
 0x25c   :  { %v2329_v49 = vpop.f32.mrf.mxu1 }
 0x25d   :  { %v8330_v50 = vadd.f32 %v2329_v49, %v2251_v47  ;;  %v3873_v51 = vsel %vm3869_vm2, %v8328_v48, -inf }
 0x25e   :  { %3874 = vmax.xlane.f32.xlu1 %v3873_v51 }
 0x25f   :  { %v3870_v52 = vsel %vm3869_vm2, %v8330_v50, -inf }
 0x260   :  { %3871 = vmax.xlane.f32.xlu0 %v3870_v52 }
 0x2b4   :  { %v7175_v53 = vpop.f32.mrf.mxu0 }
 0x2b5   :  { %v2431_v59 = vadd.f32 %v7175_v53, %v8319_v28 }
 0x2b6   :  { %v2420_v55 = vpop.f32.mrf.mxu0 }
 0x2b7   :  { %v2421_v57 = vadd.f32 %v2420_v55, %v8324_v31 }
 0x2bc   :  { %v7182_v54 = vpop.f32.mrf.mxu1  ;;  %v7189_v58 = vpop.f32.mrf.mxu0 }
 0x2bd   :  { %v2518_v62 = vadd.f32 %v7182_v54, %v2431_v59 }
 0x2be   :  { %v2511_v56 = vpop.f32.mrf.mxu1  ;;  %v2593_v63 = vpop.f32.mrf.mxu0 }
 0x2bf   :  { %v2512_v60 = vadd.f32 %v2511_v56, %v2421_v57  ;;  %v2601_v4 = vadd.f32 %v7189_v58, %v2518_v62 }
 0x2c1   :  { %v2594_v1 = vadd.f32 %v2593_v63, %v2512_v60 }
 0x2c4   :  { %v7196_v61 = vpop.f32.mrf.mxu1 }
 0x2c5   :  { %v7203_v2 = vpop.f32.mrf.mxu0  ;;  %v2684_v7 = vadd.f32 %v7196_v61, %v2601_v4 }
 0x2c6   :  { %v2675_v0 = vpop.f32.mrf.mxu1 }
 0x2c7   :  { %v2676_v5 = vadd.f32 %v2675_v0, %v2594_v1  ;;  %v2760_v8 = vpop.f32.mrf.mxu0  ;;  %v2767_v14 = vadd.f32 %v7203_v2, %v2684_v7 }
 0x2c9   :  { %v2761_v6 = vadd.f32 %v2760_v8, %v2676_v5 }
 0x2cc   :  { %v7210_v10 = vpop.f32.mrf.mxu1 }
 0x2cd   :  { %v8340_v17 = vadd.f32 %v7210_v10, %v2767_v14  ;;  %v7217_v19 = vpop.f32.mrf.mxu0 }
 0x2ce   :  { %v2839_v3 = vpop.f32.mrf.mxu1  ;;  %v2941_v29 = vadd.f32 %v7217_v19, %v8319_v28 }
 0x2cf   :  { %v8338_v16 = vadd.f32 %v2839_v3, %v2761_v6  ;;  %v3879_v25 = vsel %vm3869_vm2, %v8340_v17, -inf  ;;  %v2930_v27 = vpop.f32.mrf.mxu0 }
 0x2d0   :  { %v2931_v32 = vadd.f32 %v2930_v27, %v8324_v31 }
 0x2d1   :  { %v3876_v24 = vsel %vm3869_vm2, %v8338_v16, -inf }
 0x2d2   :  { %3877 = vmax.xlane.f32.xlu0 %v3876_v24 }
 0x2d4   :  { %v7224_v21 = vpop.f32.mrf.mxu1 }
 0x2d5   :  { %v3028_v33 = vadd.f32 %v7224_v21, %v2941_v29  ;;  %v7231_v34 = vpop.f32.mrf.mxu0 }
 0x2d6   :  { %3880 = vmax.xlane.f32.xlu0 %v3879_v25  ;;  %v3021_v30 = vpop.f32.mrf.mxu1 }
 0x2d7   :  { %v3022_v35 = vadd.f32 %v3021_v30, %v2931_v32  ;;  %v3111_v37 = vadd.f32 %v7231_v34, %v3028_v33  ;;  %v3103_v38 = vpop.f32.mrf.mxu0 }
 0x2d9   :  { %v3104_v39 = vadd.f32 %v3103_v38, %v3022_v35 }
 0x2dc   :  { %v7238_v36 = vpop.f32.mrf.mxu1 }
 0x2dd   :  { %v3194_v40 = vadd.f32 %v7238_v36, %v3111_v37  ;;  %v7245_v41 = vpop.f32.mrf.mxu0 }
 0x2de   :  { %v3185_v13 = vpop.f32.mrf.mxu1 }
 0x2df   :  { %v3186_v15 = vadd.f32 %v3185_v13, %v3104_v39  ;;  %v3277_v42 = vadd.f32 %v7245_v41, %v3194_v40  ;;  %v3270_v43 = vpop.f32.mrf.mxu0 }
 0x2e1   :  { %v3271_v45 = vadd.f32 %v3270_v43, %v3186_v15 }
 0x2e4   :  { %v7252_v44 = vpop.f32.mrf.mxu1 }
 0x2e5   :  { %v8348_v46 = vadd.f32 %v7252_v44, %v3277_v42  ;;  %v7259_v57 = vpop.f32.mrf.mxu0 }
 0x2e6   :  { %v3349_v47 = vpop.f32.mrf.mxu1  ;;  %v3451_v60 = vadd.f32 %v7259_v57, %v8319_v28 }
 0x2e7   :  { %v8350_v49 = vadd.f32 %v3349_v47, %v3271_v45  ;;  %v3885_v51 = vsel %vm3869_vm2, %v8348_v46, -inf  ;;  %v3875_v52 = vpop.xlane.xlu1 %3874  ;;  %v3440_v63 = vpop.f32.mrf.mxu0 }
 0x2e8   :  { %3886 = vmax.xlane.f32.xlu0 %v3885_v51  ;;  %v3895_v56 = vsub.f32 %v8328_v48, %v3875_v52  ;;  %v3441_v21 = vadd.f32 %v3440_v63, %v8324_v31 }
 0x2e9   :  { %v3872_v53 = vpop.xlane.xlu0 %3871  ;;  %v3882_v54 = vsel %vm3869_vm2, %v8350_v49, -inf }
 0x2ea   :  { %v3894_v55 = vsub.f32 %v8330_v50, %v3872_v53  ;;  %3883 = vmax.xlane.f32.xlu1 %v3882_v54  ;;  %v3904_v61 = vmul.f32 1.442695, %v3895_v56 }
 0x2ec   :  { %v3902_v58 = vmul.f32 1.442695, %v3894_v55  ;;  %v7266_v59 = vpop.f32.mrf.mxu1 }
 0x2ed   :  { %v3538_v62 = vadd.f32 %v7266_v59, %v3451_v60  ;;  %v7273_v1 = vpop.f32.mrf.mxu0 }
 0x2ee   :  { %7546 = vpow2.f32 %v3902_v58  ;;  %v3531_v0 = vpop.f32.mrf.mxu1 }
 0x2ef   :  { %7548 = vpow2.f32 %v3904_v61  ;;  %v3621_v4 = vadd.f32 %v7273_v1, %v3538_v62  ;;  %v3613_v7 = vpop.f32.mrf.mxu0  ;;  %v3532_v25 = vadd.f32 %v3531_v0, %v3441_v21 }
 0x2f1   :  { %v3614_v27 = vadd.f32 %v3613_v7, %v3532_v25 }
 0x2f4   :  { %v7280_v2 = vpop.f32.mrf.mxu1 }
 0x2f5   :  { %v3704_v5 = vadd.f32 %v7280_v2, %v3621_v4  ;;  %v7287_v50 = vpop.f32.mrf.mxu0 }
 0x2f6   :  { %v3695_v8 = vpop.f32.mrf.mxu1 }
 0x2f7   :  { %v3787_v48 = vadd.f32 %v7287_v50, %v3704_v5  ;;  %v3696_v29 = vadd.f32 %v3695_v8, %v3614_v27  ;;  %v3780_v30 = vpop.f32.mrf.mxu0 }
 0x2f9   :  { %v3781_v33 = vadd.f32 %v3780_v30, %v3696_v29 }
 0x2fb   :  { %v7547_v10 = vpop.eup %7546 }
 0x2fc   :  { %v7294_v6 = vpop.f32.mrf.mxu1  ;;  %v3918_v3 = vsel %vm3869_vm2, %v7547_v10, 0.0  ;;  %v7549_v24 = vpop.eup %7548 }
 0x2fd   :  { %v8360_v14 = vadd.f32 %v7294_v6, %v3787_v48  ;;  %3919 = vadd.xlane.f32.xlu1 %v3918_v3  ;;  %v3921_v19 = vsel %vm3869_vm2, %v7549_v24, 0.0 }
 0x2fe   :  { %v3859_v32 = vpop.f32.mrf.mxu1 }
 0x2ff   :  { %v3891_v28 = vsel %vm3869_vm2, %v8360_v14, -inf  ;;  %v8368_v34 = vadd.f32 %v3859_v32, %v3781_v33 }
 0x300   :  { %3892 = vmax.xlane.f32.xlu0 %v3891_v28 }
 0x301   :  { %v3888_v35 = vsel %vm3869_vm2, %v8368_v34, -inf }
 0x304   :  { %3922 = vadd.xlane.f32.xlu0 %v3921_v19 }
 0x30e   :  { %1810 = vrot.lane.b32.xlu1 %v8263_v12, %s7801_s6 }
 0x332   :  { %3889 = vmax.xlane.f32.xlu1 %v3888_v35 }
 0x35b   :  { %v3878_v36 = vpop.xlane.xlu0 %3877 }
 0x35c   :  { %v3896_v37 = vsub.f32 %v8338_v16, %v3878_v36 }
 0x35e   :  { %v3906_v38 = vmul.f32 1.442695, %v3896_v37 }
 0x35f   :  { %v3881_v13 = vpop.xlane.xlu0 %3880 }
 0x360   :  { %7550 = vpow2.f32 %v3906_v38  ;;  %v3897_v31 = vsub.f32 %v8340_v17, %v3881_v13 }
 0x362   :  { %v3908_v39 = vmul.f32 1.442695, %v3897_v31 }
 0x364   :  { %7552 = vpow2.f32 %v3908_v39 }
 0x36d   :  { %v8374_v40 = vpop.eup %7550 }
 0x36e   :  { %v3924_v41 = vsel %vm3869_vm2, %v8374_v40, 0.0 }
 0x36f   :  { %3925 = vadd.xlane.f32.xlu1 %v3924_v41 }
 0x371   :  { %v8378_v15 = vpop.eup %7552  ;;  %v3887_v42 = vpop.xlane.xlu0 %3886 }
 0x372   :  { %v3899_v43 = vsub.f32 %v8348_v46, %v3887_v42  ;;  %v3927_v16 = vsel %vm3869_vm2, %v8378_v15, 0.0 }
 0x373   :  { %3928 = vadd.xlane.f32.xlu0 %v3927_v16  ;;  %v3884_v17 = vpop.xlane.xlu1 %3883 }
 0x374   :  { %v3912_v44 = vmul.f32 1.442695, %v3899_v43  ;;  %v3898_v46 = vsub.f32 %v8350_v49, %v3884_v17 }
 0x376   :  { %7554 = vpow2.f32 %v3912_v44  ;;  %v3910_v54 = vmul.f32 1.442695, %v3898_v46 }
 0x380   :  { %1816 = vrot.lane.b32.xlu1 %v8263_v12, %s7802_s8 }
 0x383   :  { %v8385_v45 = vpop.eup %7554 }
 0x384   :  { %v3933_v47 = vsel %vm3869_vm2, %v8385_v45, 0.0 }
 0x385   :  { %3934 = vadd.xlane.f32.xlu0 %v3933_v47 }
 0x386   :  { %v3920_v51 = vpop.xlane.xlu1 %3919 }
 0x387   :  { %7556 = vrcp.f32 %v3920_v51 }
 0x389   :  { %v3893_v52 = vpop.xlane.xlu0 %3892 }
 0x38a   :  { %v1811_v56 = vpop.permute.xlu1 %1810  ;;  %v3901_v8 = vsub.f32 %v8360_v14, %v3893_v52 }
 0x38b   :  { %v8391_v59 = vand.u32 4294901760, %v1811_v56 }
 0x38c   :  { %v3916_v28 = vmul.f32 1.442695, %v3901_v8 }
 0x38d   :  { %v3923_v53 = vpop.xlane.xlu0 %3922  ;;  %v8396_v49 = vsub.f32 %v1811_v56, %v8391_v59 }
 0x38e   :  { %7558 = vrcp.f32 %v3923_v53 }
 0x38f   :  { %7560 = vpow2.f32 %v3910_v54  ;;  %v8402_v50 = vand.u32 4294901760, %v8396_v49 }
 0x390   :  { %7562 = vpow2.f32 %v3916_v28 }
 0x391   :  { %v4591_v3 = vsub.f32 %v8396_v49, %v8402_v50 }
 0x394   :  { %v7557_v55 = vpop.eup %7556 }
 0x395   :  { %v3950_v57 = vmul.f32 %v7557_v55, %v7547_v10 }
 0x397   :  { %v3959_v58 = vsel %vm3869_vm2, %v3950_v57, 0 }
 0x398   :  { %v4031_v60 = vand.u32 4294901760, %v3959_v58 }
 0x39a   :  { %7306 = vmatprep.mubr.f32.mxu1 %v4031_v60  ;;  %v4032_v61 = vsub.f32 %v3959_v58, %v4031_v60 }
 0x39b   :  { %1808 = vrot.lane.b32.xlu0 %v8270_v18, %s7801_s6  ;;  %v7559_v62 = vpop.eup %7558 }
 0x39c   :  { %v4033_v63 = vand.u32 4294901760, %v4032_v61  ;;  %v3951_v0 = vmul.f32 %v7559_v62, %v7549_v24  ;;  %v8399_v4 = vpop.eup %7560  ;;  %v4592_v24 = vand.u32 4294901760, %v4591_v3 }
 0x39d   :  { %v3930_v48 = vsel %vm3869_vm2, %v8399_v4, 0.0 }
 0x39e   :  { %v4034_v1 = vsub.f32 %v4032_v61, %v4033_v63  ;;  %v3962_v2 = vsel %vm3869_vm2, %v3951_v0, 0 }
 0x39f   :  { %v4041_v7 = vand.u32 4294901760, %v3962_v2 }
 0x3a0   :  { %v4035_v5 = vand.u32 4294901760, %v4034_v1 }
 0x3a1   :  { %v4042_v10 = vsub.f32 %v3962_v2, %v4041_v7  ;;  %7307 = vmatmul.mubr.f32.vlgmr.msra.gmra.mxu1 %v4041_v7 }
 0x3a2   :  { %7299 = vmatprep.mubr.f32.mxu0 %v4035_v5  ;;  %7317 = vmatpush3.msra.mxu1 %v8268_v11 }
 0x3a3   :  { %7320 = vmatprep.mubr.f32.mxu1 %v4033_v63  ;;  %7318 = vmatprep.subr.mxu1 %v8275_v9  ;;  %v4043_v6 = vand.u32 4294901760, %v4042_v10 }
 0x3a4   :  { %3931 = vadd.xlane.f32.xlu1 %v3930_v48  ;;  %7319 = vmatpush3.msra.mxu1 %v8275_v9 }
 0x3a5   :  { %7330 = vmatprep.subr.mxu1 %v8268_v11  ;;  %7321 = vmatmul.mubr.f32.vlgmr.msra.gmra.mxu1 %v4043_v6  ;;  %v4044_v14 = vsub.f32 %v4042_v10, %v4043_v6 }
 0x3a6   :  { %7331 = vmatpush3.msra.mxu1 %v8268_v11  ;;  %7334 = vmatprep.mubr.f32.mxu1 %v4031_v60  ;;  %v8427_v11 = vpop.eup %7562 }
 0x3a7   :  { %7332 = vmatprep.subr.mxu1 %v8275_v9  ;;  %v4045_v19 = vand.u32 4294901760, %v4044_v14 }
 0x3a8   :  { %7333 = vmatpush3.msra.mxu1 %v8275_v9  ;;  %v3939_v9 = vsel %vm3869_vm2, %v8427_v11, 0.0 }
 0x3a9   :  { %7344 = vmatprep.subr.mxu1 %v4592_v24  ;;  %7300 = vmatmul.mubr.f32.vlgmr.msra.gmra.mxu0 %v4045_v19 }
 0x3aa   :  { %7310 = vmatpush3.msra.mxu0 %v8279_v20  ;;  %7335 = vmatmul.mubr.f32.vlgmr.msra.gmra.mxu1 %v4041_v7 }
 0x3ab   :  { %7345 = vmatpush3.msra.mxu1 %v4592_v24  ;;  %7311 = vmatprep.subr.mxu0 %v8291_v23 }
 0x3ac   :  { %7313 = vmatprep.mubr.f32.mxu0 %v4032_v61  ;;  %7312 = vmatpush3.msra.mxu0 %v8291_v23 }
 0x3ad   :  { %7323 = vmatprep.subr.mxu0 %v8287_v22  ;;  %7314 = vmatmul.mubr.f32.vlgmr.msra.gmra.mxu0 %v4042_v10 }
 0x3ae   :  { %7324 = vmatpush3.msra.mxu0 %v8287_v22  ;;  %7327 = vmatprep.mubr.f32.mxu0 %v4031_v60 }
 0x3af   :  { %7325 = vmatprep.subr.mxu0 %v8300_v26 }
 0x3b0   :  { %7326 = vmatpush3.msra.mxu0 %v8300_v26 }
 0x3b1   :  { %7337 = vmatprep.subr.mxu0 %v8391_v59  ;;  %7328 = vmatmul.mubr.f32.vlgmr.msra.gmra.mxu0 %v4041_v7 }
 0x3b2   :  { %7338 = vmatpush3.msra.mxu0 %v8391_v59 }
 0x3b5   :  { %1814 = vrot.lane.b32.xlu1 %v8270_v18, %s7802_s8 }
 0x3ba   :  { %3940 = vadd.xlane.f32.xlu0 %v3939_v9 }
 0x3bb   :  { %v3890_v20 = vpop.xlane.xlu1 %3889 }
 0x3bc   :  { %v3900_v22 = vsub.f32 %v8368_v34, %v3890_v20 }
 0x3be   :  { %v3914_v23 = vmul.f32 1.442695, %v3900_v22 }
 0x3c0   :  { %7564 = vpow2.f32 %v3914_v23 }
 0x3cd   :  { %v8434_v26 = vpop.eup %7564 }
 0x3ce   :  { %v3936_v21 = vsel %vm3869_vm2, %v8434_v26, 0.0 }
 0x3d0   :  { %1822 = vrot.lane.b32.xlu0 %v8263_v12, %s7803_s5 }
 0x3d9   :  { %3937 = vadd.xlane.f32.xlu1 %v3936_v21 }
 0x3ea   :  { %1820 = vrot.lane.b32.xlu1 %v8270_v18, %s7803_s5 }
 0x3f8   :  { %v3926_v25 = vpop.xlane.xlu1 %3925 }
 0x3f9   :  { %7566 = vrcp.f32 %v3926_v25 }
 0x3fc   :  { %v3929_v27 = vpop.xlane.xlu0 %3928 }
 0x3fd   :  { %7568 = vrcp.f32 %v3929_v27 }
 0x406   :  { %v7567_v29 = vpop.eup %7566 }
 0x407   :  { %v3952_v30 = vmul.f32 %v7567_v29, %v8374_v40  ;;  %v1817_v40 = vpop.permute.xlu1 %1816 }
 0x408   :  { %v8444_v17 = vand.u32 4294901760, %v1817_v40 }
 0x409   :  { %v4467_v32 = vsel %vm3869_vm2, %v3952_v30, 0 }
 0x40a   :  { %v7569_v33 = vpop.eup %7568  ;;  %v4539_v12 = vand.u32 4294901760, %v4467_v32  ;;  %v8449_v52 = vsub.f32 %v1817_v40, %v8444_v17 }
 0x40b   :  { %v3953_v34 = vmul.f32 %v7569_v33, %v8378_v15 }
 0x40c   :  { %7348 = vmatprep.mubr.f32.mxu1 %v4539_v12  ;;  %v4540_v35 = vsub.f32 %v4467_v32, %v4539_v12  ;;  %v8454_v53 = vand.u32 4294901760, %v8449_v52 }
 0x40d   :  { %v4470_v36 = vsel %vm3869_vm2, %v3953_v34, 0 }
 0x40e   :  { %v3935_v37 = vpop.xlane.xlu0 %3934  ;;  %v4541_v38 = vand.u32 4294901760, %v4540_v35  ;;  %v4549_v18 = vand.u32 4294901760, %v4470_v36  ;;  %v5099_v54 = vsub.f32 %v8449_v52, %v8454_v53 }
 0x40f   :  { %7570 = vrcp.f32 %v3935_v37 }
 0x410   :  { %v4542_v13 = vsub.f32 %v4540_v35, %v4541_v38  ;;  %v4550_v31 = vsub.f32 %v4470_v36, %v4549_v18  ;;  %v5100_v55 = vand.u32 4294901760, %v5099_v54 }
 0x412   :  { %v1809_v39 = vpop.permute.xlu0 %1808  ;;  %v4543_v41 = vand.u32 4294901760, %v4542_v13  ;;  %v4551_v42 = vand.u32 4294901760, %v4550_v31 }
 0x413   :  { %v4504_v43 = vand.u32 4294901760, %v1809_v39 }
 0x414   :  { %7341 = vmatprep.mubr.f32.mxu0 %v4543_v41  ;;  %v4552_v16 = vsub.f32 %v4550_v31, %v4551_v42 }
 0x415   :  { %v4596_v44 = vsub.f32 %v1809_v39, %v4504_v43  ;;  %7339 = vmatprep.subr.mxu0 %v4504_v43 }
 0x416   :  { %7340 = vmatpush3.msra.mxu0 %v4504_v43  ;;  %v4553_v15 = vand.u32 4294901760, %v4552_v16 }
 0x417   :  { %7351 = vmatprep.subr.mxu0 %v8396_v49  ;;  %v4597_v47 = vand.u32 4294901760, %v4596_v44 }
 0x418   :  { %7342 = vmatmul.mubr.f32.vlgmr.msra.gmra.mxu0 %v4553_v15 }
 0x419   :  { %7352 = vmatpush3.msra.mxu0 %v8396_v49  ;;  %7355 = vmatprep.mubr.f32.mxu0 %v4540_v35  ;;  %v4598_v51 = vsub.f32 %v4596_v44, %v4597_v47 }
 0x41a   :  { %7353 = vmatprep.subr.mxu0 %v4596_v44 }
 0x41b   :  { %7354 = vmatpush3.msra.mxu0 %v4596_v44  ;;  %v4599_v46 = vand.u32 4294901760, %v4598_v51 }
 0x41c   :  { %7365 = vmatprep.subr.mxu0 %v8402_v50  ;;  %7356 = vmatmul.mubr.f32.vlgmr.msra.gmra.mxu0 %v4550_v31  ;;  %v7571_v57 = vpop.eup %7570 }
 0x41d   :  { %7366 = vmatpush3.msra.mxu0 %v8402_v50  ;;  %7346 = vmatprep.subr.mxu1 %v4599_v46  ;;  %v3955_v60 = vmul.f32 %v7571_v57, %v8385_v45 }
 0x41e   :  { %7367 = vmatprep.subr.mxu0 %v4597_v47  ;;  %7369 = vmatprep.mubr.f32.mxu0 %v4539_v12 }
 0x41f   :  { %7347 = vmatpush3.msra.mxu1 %v4599_v46  ;;  %7368 = vmatpush3.msra.mxu0 %v4597_v47  ;;  %v4978_v49 = vsel %vm3869_vm2, %v3955_v60, 0 }
 0x420   :  { %7349 = vmatmul.mubr.f32.vlgmr.msra.gmra.mxu1 %v4549_v18  ;;  %7358 = vmatprep.subr.mxu1 %v8391_v59  ;;  %v5057_v0 = vand.u32 4294901760, %v4978_v49 }
 0x421   :  { %7379 = vmatprep.subr.mxu0 %v8444_v17  ;;  %7359 = vmatpush3.msra.mxu1 %v8391_v59 }
 0x422   :  { %7362 = vmatprep.mubr.f32.mxu1 %v4541_v38  ;;  %7370 = vmatmul.mubr.f32.vlgmr.msra.gmra.mxu0 %v4549_v18  ;;  %v5058_v7 = vsub.f32 %v4978_v49, %v5057_v0 }
 0x423   :  { %7380 = vmatpush3.msra.mxu0 %v8444_v17  ;;  %7360 = vmatprep.subr.mxu1 %v4504_v43 }
 0x424   :  { %7361 = vmatpush3.msra.mxu1 %v4504_v43  ;;  %v5059_v8 = vand.u32 4294901760, %v5058_v7 }
 0x425   :  { %7363 = vmatmul.mubr.f32.vlgmr.msra.gmra.mxu1 %v4551_v42  ;;  %7372 = vmatprep.subr.mxu1 %v8391_v59 }
 0x426   :  { %7373 = vmatpush3.msra.mxu1 %v8391_v59  ;;  %7376 = vmatprep.mubr.f32.mxu1 %v4539_v12  ;;  %v5060_v3 = vsub.f32 %v5058_v7, %v5059_v8 }
 0x427   :  { %7374 = vmatprep.subr.mxu1 %v4504_v43 }
 0x428   :  { %7375 = vmatpush3.msra.mxu1 %v4504_v43  ;;  %v5061_v19 = vand.u32 4294901760, %v5060_v3 }
 0x429   :  { %7377 = vmatmul.mubr.f32.vlgmr.msra.gmra.mxu1 %v4549_v18  ;;  %7386 = vmatprep.subr.mxu1 %v5100_v55 }
 0x42a   :  { %7387 = vmatpush3.msra.mxu1 %v5100_v55 }
 0x42d   :  { %v3932_v56 = vpop.xlane.xlu1 %3931 }
 0x42e   :  { %7572 = vrcp.f32 %v3932_v56 }
 0x431   :  { %v1815_v58 = vpop.permute.xlu1 %1814 }
 0x432   :  { %v5012_v61 = vand.u32 4294901760, %v1815_v58 }
 0x434   :  { %v5104_v62 = vsub.f32 %v1815_v58, %v5012_v61  ;;  %7381 = vmatprep.subr.mxu0 %v5012_v61 }
 0x435   :  { %7382 = vmatpush3.msra.mxu0 %v5012_v61 }
 0x436   :  { %7393 = vmatprep.subr.mxu0 %v8449_v52  ;;  %v5105_v59 = vand.u32 4294901760, %v5104_v62 }
 0x438   :  { %v5106_v63 = vsub.f32 %v5104_v62, %v5105_v59 }
 0x43a   :  { %v5107_v1 = vand.u32 4294901760, %v5106_v63 }
 0x43b   :  { %v7573_v2 = vpop.eup %7572 }
 0x43c   :  { %7388 = vmatprep.subr.mxu1 %v5107_v1  ;;  %v3954_v5 = vmul.f32 %v7573_v2, %v8399_v4 }
 0x43d   :  { %7389 = vmatpush3.msra.mxu1 %v5107_v1 }
 0x43e   :  { %7400 = vmatprep.subr.mxu1 %v8444_v17  ;;  %v4975_v45 = vsel %vm3869_vm2, %v3954_v5, 0 }
 0x43f   :  { %v5047_v50 = vand.u32 4294901760, %v4975_v45 }
 0x441   :  { %7390 = vmatprep.mubr.f32.mxu1 %v5047_v50  ;;  %v5048_v10 = vsub.f32 %v4975_v45, %v5047_v50 }
 0x442   :  { %7391 = vmatmul.mubr.f32.vlgmr.msra.gmra.mxu1 %v5057_v0 }
 0x443   :  { %7401 = vmatpush3.msra.mxu1 %v8444_v17  ;;  %v3941_v48 = vpop.xlane.xlu0 %3940  ;;  %v5049_v6 = vand.u32 4294901760, %v5048_v10 }
 0x444   :  { %7402 = vmatprep.subr.mxu1 %v5012_v61  ;;  %7574 = vrcp.f32 %v3941_v48 }
 0x445   :  { %7403 = vmatpush3.msra.mxu1 %v5012_v61  ;;  %7404 = vmatprep.mubr.f32.mxu1 %v5049_v6  ;;  %v5050_v4 = vsub.f32 %v5048_v10, %v5049_v6 }
 0x446   :  { %7414 = vmatprep.subr.mxu1 %v8444_v17  ;;  %7405 = vmatmul.mubr.f32.vlgmr.msra.gmra.mxu1 %v5059_v8 }
 0x447   :  { %7415 = vmatpush3.msra.mxu1 %v8444_v17  ;;  %7418 = vmatprep.mubr.f32.mxu1 %v5047_v50  ;;  %v1823_v28 = vpop.permute.xlu0 %1822  ;;  %v5051_v14 = vand.u32 4294901760, %v5050_v4 }
 0x448   :  { %7416 = vmatprep.subr.mxu1 %v5012_v61  ;;  %v8473_v24 = vand.u32 4294901760, %v1823_v28 }
 0x449   :  { %7417 = vmatpush3.msra.mxu1 %v5012_v61  ;;  %7383 = vmatprep.mubr.f32.mxu0 %v5051_v14 }
 0x44a   :  { %v8476_v9 = vsub.f32 %v1823_v28, %v8473_v24  ;;  %7384 = vmatmul.mubr.f32.vlgmr.msra.gmra.mxu0 %v5061_v19  ;;  %7419 = vmatmul.mubr.f32.vlgmr.msra.gmra.mxu1 %v5057_v0 }
 0x44b   :  { %7394 = vmatpush3.msra.mxu0 %v8449_v52  ;;  %7397 = vmatprep.mubr.f32.mxu0 %v5048_v10 }
 0x44c   :  { %7395 = vmatprep.subr.mxu0 %v5104_v62  ;;  %v8480_v20 = vand.u32 4294901760, %v8476_v9 }
 0x44d   :  { %7396 = vmatpush3.msra.mxu0 %v5104_v62 }
 0x44e   :  { %7407 = vmatprep.subr.mxu0 %v8454_v53  ;;  %7398 = vmatmul.mubr.f32.vlgmr.msra.gmra.mxu0 %v5058_v7  ;;  %v5607_v22 = vsub.f32 %v8476_v9, %v8480_v20 }
 0x44f   :  { %7408 = vmatpush3.msra.mxu0 %v8454_v53  ;;  %7411 = vmatprep.mubr.f32.mxu0 %v5047_v50 }
 0x450   :  { %7409 = vmatprep.subr.mxu0 %v5105_v59  ;;  %v5608_v23 = vand.u32 4294901760, %v5607_v22 }
 0x451   :  { %7410 = vmatpush3.msra.mxu0 %v5105_v59  ;;  %v7575_v25 = vpop.eup %7574 }
 0x452   :  { %7421 = vmatprep.subr.mxu0 %v8473_v24  ;;  %7412 = vmatmul.mubr.f32.vlgmr.msra.gmra.mxu0 %v5057_v0  ;;  %v3957_v30 = vmul.f32 %v7575_v25, %v8427_v11 }
 0x453   :  { %7422 = vmatpush3.msra.mxu0 %v8473_v24  ;;  %7428 = vmatprep.subr.mxu1 %v5608_v23 }
 0x454   :  { %7429 = vmatpush3.msra.mxu1 %v5608_v23  ;;  %v5486_v35 = vsel %vm3869_vm2, %v3957_v30, 0 }
 0x455   :  { %v5565_v39 = vand.u32 4294901760, %v5486_v35 }
 0x457   :  { %v5566_v47 = vsub.f32 %v5486_v35, %v5565_v39 }
 0x459   :  { %v5567_v57 = vand.u32 4294901760, %v5566_v47 }
 0x45b   :  { %v5568_v60 = vsub.f32 %v5566_v47, %v5567_v57 }
 0x45d   :  { %v5569_v49 = vand.u32 4294901760, %v5568_v60 }
 0x461   :  { %v7308_v27 = vpop.f32.mrf.mxu1 }
 0x462   :  { %v3938_v21 = vpop.xlane.xlu1 %3937 }
 0x463   :  { %7576 = vrcp.f32 %v3938_v21  ;;  %v4128_v33 = vpop.f32.mrf.mxu1 }
 0x465   :  { %v7322_v38 = vpop.f32.mrf.mxu1 }
 0x466   :  { %v1821_v29 = vpop.permute.xlu1 %1820 }
 0x467   :  { %v5520_v32 = vand.u32 4294901760, %v1821_v29  ;;  %v4292_v40 = vpop.f32.mrf.mxu1 }
 0x469   :  { %v5612_v12 = vsub.f32 %v1821_v29, %v5520_v32  ;;  %7423 = vmatprep.subr.mxu0 %v5520_v32  ;;  %v7301_v34 = vpop.f32.mrf.mxu0 }
 0x46a   :  { %7424 = vmatpush3.msra.mxu0 %v5520_v32  ;;  %v4135_v36 = vadd.f32 %v7308_v27, %v7301_v34  ;;  %v7336_v54 = vpop.f32.mrf.mxu1 }
 0x46b   :  { %7435 = vmatprep.subr.mxu0 %v8476_v9  ;;  %v5613_v37 = vand.u32 4294901760, %v5612_v12  ;;  %v4037_v18 = vpop.f32.mrf.mxu0 }
 0x46c   :  { %v4129_v13 = vadd.f32 %v4128_v33, %v4037_v18  ;;  %v8506_v2 = vpop.f32.mrf.mxu1  ;;  %v6024_v33 = vld [vmem:[#allocation14 + $0x18] sm:$0xff] }
 0x46d   :  { %v5614_v31 = vsub.f32 %v5612_v12, %v5613_v37  ;;  %v7315_v41 = vpop.f32.mrf.mxu0  ;;  %v8510_v34 = vand.u32 4294901760, %v6024_v33 }
 0x46e   :  { %v4218_v42 = vadd.f32 %v7315_v41, %v4135_v36 }
 0x46f   :  { %v5615_v11 = vand.u32 4294901760, %v5614_v31  ;;  %v4210_v16 = vpop.f32.mrf.mxu0  ;;  %v8513_v18 = vsub.f32 %v6024_v33, %v8510_v34 }
 0x470   :  { %v7577_v43 = vpop.eup %7576  ;;  %v4211_v44 = vadd.f32 %v4210_v16, %v4129_v13  ;;  %v4301_v15 = vadd.f32 %v7322_v38, %v4218_v42 }
 0x471   :  { %7430 = vmatprep.subr.mxu1 %v5615_v11  ;;  %v3956_v17 = vmul.f32 %v7577_v43, %v8434_v26  ;;  %v7329_v51 = vpop.f32.mrf.mxu0  ;;  %v8518_v41 = vand.u32 4294901760, %v8513_v18 }
 0x472   :  { %7431 = vmatpush3.msra.mxu1 %v5615_v11  ;;  %v4384_v52 = vadd.f32 %v7329_v51, %v4301_v15  ;;  %v8492_v46 = vadd.f32 %v4292_v40, %v4211_v44 }
 0x473   :  { %7442 = vmatprep.subr.mxu1 %v8473_v24  ;;  %v5483_v53 = vsel %vm3869_vm2, %v3956_v17, 0  ;;  %v8504_v59 = vpop.f32.mrf.mxu0  ;;  %v6155_v16 = vsub.f32 %v8513_v18, %v8518_v41 }
 0x474   :  { %v5555_v55 = vand.u32 4294901760, %v5483_v53  ;;  %v8496_v56 = vadd.f32 %v7336_v54, %v4384_v52  ;;  %v6023_v54 = vld [vmem:[#allocation14 + $0x10] sm:$0xff] }
 0x476   :  { %7432 = vmatprep.mubr.f32.mxu1 %v5555_v55  ;;  %v5556_v58 = vsub.f32 %v5483_v53, %v5555_v55 }
 0x477   :  { %7433 = vmatmul.mubr.f32.vlgmr.msra.gmra.mxu1 %v5565_v39 }
 0x478   :  { %7443 = vmatpush3.msra.mxu1 %v8473_v24  ;;  %v5557_v26 = vand.u32 4294901760, %v5556_v58 }
 0x479   :  { %7444 = vmatprep.subr.mxu1 %v5520_v32 }
 0x47a   :  { %7445 = vmatpush3.msra.mxu1 %v5520_v32  ;;  %7446 = vmatprep.mubr.f32.mxu1 %v5557_v26  ;;  %v5558_v61 = vsub.f32 %v5556_v58, %v5557_v26 }
 0x47b   :  { %7456 = vmatprep.subr.mxu1 %v8473_v24  ;;  %7447 = vmatmul.mubr.f32.vlgmr.msra.gmra.mxu1 %v5567_v57  ;;  %v6022_v57 = vld [vmem:[#allocation14 + $0x8] sm:$0xff] }
 0x47c   :  { %7457 = vmatpush3.msra.mxu1 %v8473_v24  ;;  %7460 = vmatprep.mubr.f32.mxu1 %v5555_v55  ;;  %v5559_v62 = vand.u32 4294901760, %v5558_v61  ;;  %v8527_v26 = vand.u32 4294901760, %v6022_v57  ;;  %v6021_v61 = vld [vmem:[#allocation14] sm:$0xff] }
 0x47d   :  { %7458 = vmatprep.subr.mxu1 %v5520_v32 }
 0x47e   :  { %7459 = vmatpush3.msra.mxu1 %v5520_v32  ;;  %7425 = vmatprep.mubr.f32.mxu0 %v5559_v62 }
 0x47f   :  { %7426 = vmatmul.mubr.f32.vlgmr.msra.gmra.mxu0 %v5569_v49  ;;  %7461 = vmatmul.mubr.f32.vlgmr.msra.gmra.mxu1 %v5565_v39  ;;  %v8535_v49 = vsub.f32 %v6022_v57, %v8527_v26 }
 0x480   :  { %7436 = vmatpush3.msra.mxu0 %v8476_v9  ;;  %7439 = vmatprep.mubr.f32.mxu0 %v5556_v58 }
 0x481   :  { %7437 = vmatprep.subr.mxu0 %v5612_v12 }
 0x482   :  { %7438 = vmatpush3.msra.mxu0 %v5612_v12 }
 0x483   :  { %7449 = vmatprep.subr.mxu0 %v8480_v20  ;;  %7440 = vmatmul.mubr.f32.vlgmr.msra.gmra.mxu0 %v5566_v47  ;;  %v6156_v47 = vand.u32 4294901760, %v6155_v16 }
 0x484   :  { %7450 = vmatpush3.msra.mxu0 %v8480_v20  ;;  %7453 = vmatprep.mubr.f32.mxu0 %v5555_v55  ;;  %v8522_v55 = vand.u32 4294901760, %v6023_v54 }
 0x485   :  { %7451 = vmatprep.subr.mxu0 %v5613_v37  ;;  %7474 = vmatprep.subr.mxu1 %v6156_v47 }
 0x486   :  { %7452 = vmatpush3.msra.mxu0 %v5613_v37  ;;  %7475 = vmatpush3.msra.mxu1 %v6156_v47  ;;  %v8525_v58 = vsub.f32 %v6023_v54, %v8522_v55 }
 0x487   :  { %7454 = vmatmul.mubr.f32.vlgmr.msra.gmra.mxu0 %v5565_v39  ;;  %7463 = vmatprep.subr.mxu0 %v8510_v34 }
 0x488   :  { %7464 = vmatpush3.msra.mxu0 %v8510_v34  ;;  %v8532_v62 = vand.u32 4294901760, %v8525_v58 }
 0x489   :  { %7465 = vmatprep.subr.mxu0 %v8522_v55 }
 0x48a   :  { %7466 = vmatpush3.msra.mxu0 %v8522_v55 }
 0x48b   :  { %7467 = vmatprep.subr.mxu0 %v8527_v26 }
 0x48c   :  { %7468 = vmatpush3.msra.mxu0 %v8527_v26 }
 0x4d8   :  { %v7343_v63 = vpop.f32.mrf.mxu0 }
 0x4da   :  { %v4545_v0 = vpop.f32.mrf.mxu0 }
 0x4dc   :  { %v7357_v1 = vpop.f32.mrf.mxu0 }
 0x4de   :  { %v4718_v7 = vpop.f32.mrf.mxu0 }
 0x4e0   :  { %v7350_v5 = vpop.f32.mrf.mxu1 }
 0x4e1   :  { %v4643_v45 = vadd.f32 %v7350_v5, %v7343_v63  ;;  %v8537_v63 = vand.u32 4294901760, %v6021_v61 }
 0x4e2   :  { %v4636_v50 = vpop.f32.mrf.mxu1  ;;  %v7371_v48 = vpop.f32.mrf.mxu0 }
 0x4e3   :  { %v4637_v8 = vadd.f32 %v4636_v50, %v4545_v0  ;;  %v4726_v10 = vadd.f32 %v7357_v1, %v4643_v45  ;;  %v6162_v0 = vsub.f32 %v8525_v58, %v8532_v62  ;;  %v8544_v1 = vand.u32 4294901760, %v8535_v49  ;;  %7469 = vmatprep.subr.mxu0 %v8537_v63 }
 0x4e4   :  { %v4885_v19 = vpop.f32.mrf.mxu0  ;;  %v8547_v5 = vsub.f32 %v6021_v61, %v8537_v63  ;;  %7470 = vmatpush3.msra.mxu0 %v8537_v63 }
 0x4e5   :  { %v7364_v6 = vpop.f32.mrf.mxu1  ;;  %v4719_v3 = vadd.f32 %v4718_v7, %v4637_v8  ;;  %v6163_v50 = vand.u32 4294901760, %v6162_v0  ;;  %v6169_v8 = vsub.f32 %v8535_v49, %v8544_v1  ;;  %7485 = vmatprep.subr.mxu0 %v8513_v18 }
 0x4e6   :  { %v4809_v4 = vadd.f32 %v7364_v6, %v4726_v10  ;;  %v8554_v10 = vand.u32 4294901760, %v8547_v5 }
 0x4e7   :  { %v4800_v28 = vpop.f32.mrf.mxu1  ;;  %7476 = vmatprep.subr.mxu1 %v6163_v50 }
 0x4e8   :  { %v4801_v14 = vadd.f32 %v4800_v28, %v4719_v3  ;;  %v4892_v24 = vadd.f32 %v7371_v48, %v4809_v4  ;;  %v6170_v3 = vand.u32 4294901760, %v6169_v8  ;;  %v6176_v4 = vsub.f32 %v8547_v5, %v8554_v10  ;;  %7477 = vmatpush3.msra.mxu1 %v6163_v50 }
 0x4e9   :  { %v7378_v9 = vpop.f32.mrf.mxu1 }
 0x4ea   :  { %v4971_v20 = vadd.f32 %v7378_v9, %v4892_v24  ;;  %v4886_v22 = vadd.f32 %v4885_v19, %v4801_v14  ;;  %7478 = vmatprep.subr.mxu1 %v6170_v3  ;;  %v6177_v9 = vand.u32 4294901760, %v6176_v4 }
 0x4eb   :  { %v4964_v23 = vpop.f32.mrf.mxu1  ;;  %7479 = vmatpush3.msra.mxu1 %v6170_v3 }
 0x4ec   :  { %v4965_v21 = vadd.f32 %v4964_v23, %v4886_v22  ;;  %5994 = vrot.lane.b32.xlu1 %v4971_v20, %s7793_s19  ;;  %7480 = vmatprep.subr.mxu1 %v6177_v9 }
 0x4ed   :  { %7481 = vmatpush3.msra.mxu1 %v6177_v9 }
 0x4ee   :  { %5992 = vrot.lane.b32.xlu0 %v4965_v21, %s7793_s19  ;;  %7496 = vmatprep.subr.mxu1 %v8510_v34 }
 0x502   :  { %v7392_v25 = vpop.f32.mrf.mxu1 }
 0x504   :  { %v5144_v27 = vpop.f32.mrf.mxu1 }
 0x506   :  { %v7406_v29 = vpop.f32.mrf.mxu1 }
 0x508   :  { %v5308_v35 = vpop.f32.mrf.mxu1 }
 0x50a   :  { %v7385_v30 = vpop.f32.mrf.mxu0  ;;  %v7420_v42 = vpop.f32.mrf.mxu1 }
 0x50b   :  { %v5151_v12 = vadd.f32 %v7392_v25, %v7385_v30 }
 0x50c   :  { %v5053_v32 = vpop.f32.mrf.mxu0  ;;  %v5472_v51 = vpop.f32.mrf.mxu1 }
 0x50d   :  { %v5145_v37 = vadd.f32 %v5144_v27, %v5053_v32 }
 0x50e   :  { %v7399_v36 = vpop.f32.mrf.mxu0 }
 0x50f   :  { %v5234_v38 = vadd.f32 %v7399_v36, %v5151_v12 }
 0x510   :  { %v5226_v13 = vpop.f32.mrf.mxu0 }
 0x511   :  { %v5227_v31 = vadd.f32 %v5226_v13, %v5145_v37  ;;  %v5317_v39 = vadd.f32 %v7406_v29, %v5234_v38  ;;  %v4378_v38 = vadd.f32 %v8504_v59, %v8492_v46 }
 0x512   :  { %v7413_v11 = vpop.f32.mrf.mxu0 }
 0x513   :  { %v5400_v43 = vadd.f32 %v7413_v11, %v5317_v39  ;;  %v5309_v40 = vadd.f32 %v5308_v35, %v5227_v31  ;;  %v4457_v39 = vadd.f32 %v8506_v2, %v4378_v38 }
 0x514   :  { %v5393_v44 = vpop.f32.mrf.mxu0 }
 0x515   :  { %v5479_v15 = vadd.f32 %v7420_v42, %v5400_v43  ;;  %v5394_v17 = vadd.f32 %v5393_v44, %v5309_v40 }
 0x517   :  { %v5473_v52 = vadd.f32 %v5472_v51, %v5394_v17  ;;  %6002 = vrot.lane.b32.xlu1 %v5479_v15, %s7804_s9 }
 0x519   :  { %6000 = vrot.lane.b32.xlu0 %v5473_v52, %s7804_s9 }
 0x537   :  { %v7434_v53 = vpop.f32.mrf.mxu1 }
 0x539   :  { %v5652_v60 = vpop.f32.mrf.mxu1 }
 0x53b   :  { %v7448_v7 = vpop.f32.mrf.mxu1 }
 0x53d   :  { %v5816_v28 = vpop.f32.mrf.mxu1 }
 0x53f   :  { %v7427_v45 = vpop.f32.mrf.mxu0  ;;  %v7462_v21 = vpop.f32.mrf.mxu1 }
 0x540   :  { %v5659_v6 = vadd.f32 %v7434_v53, %v7427_v45 }
 0x541   :  { %v5561_v48 = vpop.f32.mrf.mxu0  ;;  %v5980_v12 = vpop.f32.mrf.mxu1 }
 0x542   :  { %v5653_v24 = vadd.f32 %v5652_v60, %v5561_v48 }
 0x543   :  { %v7441_v14 = vpop.f32.mrf.mxu0 }
 0x544   :  { %v5742_v19 = vadd.f32 %v7441_v14, %v5659_v6 }
 0x545   :  { %v5734_v20 = vpop.f32.mrf.mxu0 }
 0x546   :  { %v5735_v22 = vadd.f32 %v5734_v20, %v5653_v24  ;;  %v5825_v23 = vadd.f32 %v7448_v7, %v5742_v19 }
 0x547   :  { %v7455_v25 = vpop.f32.mrf.mxu0 }
 0x548   :  { %v5908_v27 = vadd.f32 %v7455_v25, %v5825_v23  ;;  %v5817_v29 = vadd.f32 %v5816_v28, %v5735_v22 }
 0x549   :  { %v5901_v30 = vpop.f32.mrf.mxu0 }
 0x54a   :  { %v5987_v32 = vadd.f32 %v7462_v21, %v5908_v27  ;;  %v5902_v33 = vadd.f32 %v5901_v30, %v5817_v29 }
 0x54c   :  { %v5981_v35 = vadd.f32 %v5980_v12, %v5902_v33  ;;  %6010 = vrot.lane.b32.xlu1 %v5987_v32, %s7805_s22 }
 0x54e   :  { %6008 = vrot.lane.b32.xlu0 %v5981_v35, %s7805_s22 }
 0x55e   :  { %v5995_v36 = vpop.permute.xlu1 %5994 }
 0x55f   :  { %v6015_v42 = vsel %vm1828_vm1, %v8496_v56, %v5995_v36 }
 0x560   :  { %v5993_v37 = vpop.permute.xlu0 %5992 }
 0x561   :  { %v6014_v40 = vsel %vm1828_vm1, %v4457_v39, %v5993_v37 }
 0x589   :  { %v6003_v13 = vpop.permute.xlu1 %6002 }
 0x58a   :  { %v6017_v11 = vsel %vm3869_vm2, %v6015_v42, %v6003_v13 }
 0x58b   :  { %v6001_v31 = vpop.permute.xlu0 %6000 }
 0x58c   :  { %v6016_v44 = vsel %vm3869_vm2, %v6014_v40, %v6001_v31 }
 0x5be   :  { %v6011_v43 = vpop.permute.xlu1 %6010 }
 0x5bf   :  { %v6020_v16 = vsel %vm6018_vm3, %v6017_v11, %v6011_v43 }
 0x5c0   :  { %v6036_v15 = vsel %vm163_vm0, %v6020_v16, 0  ;;  %v6009_v17 = vpop.permute.xlu0 %6008 }
 0x5c1   :  { %v6117_v46 = vand.u32 4294901760, %v6036_v15  ;;  %v6019_v59 = vsel %vm6018_vm3, %v6016_v44, %v6009_v17 }
 0x5c2   :  { %v6033_v47 = vsel %vm163_vm0, %v6019_v59, 0 }
 0x5c3   :  { %v6118_v51 = vsub.f32 %v6036_v15, %v6117_v46  ;;  %v6107_v2 = vand.u32 4294901760, %v6033_v47 }
 0x5c5   :  { %v6108_v52 = vsub.f32 %v6033_v47, %v6107_v2  ;;  %7482 = vmatprep.mubr.f32.mxu1 %v6107_v2  ;;  %v6119_v56 = vand.u32 4294901760, %v6118_v51 }
 0x5c6   :  { %7483 = vmatmul.mubr.f32.vlgmr.msra.gmra.mxu1 %v6117_v46 }
 0x5c7   :  { %7497 = vmatpush3.msra.mxu1 %v8510_v34  ;;  %v6109_v53 = vand.u32 4294901760, %v6108_v52  ;;  %v6120_v57 = vsub.f32 %v6118_v51, %v6119_v56 }
 0x5c8   :  { %7498 = vmatprep.subr.mxu1 %v8522_v55 }
 0x5c9   :  { %7499 = vmatpush3.msra.mxu1 %v8522_v55  ;;  %7504 = vmatprep.mubr.f32.mxu1 %v6109_v53  ;;  %v6110_v54 = vsub.f32 %v6108_v52, %v6109_v53  ;;  %v6121_v61 = vand.u32 4294901760, %v6120_v57 }
 0x5ca   :  { %7500 = vmatprep.subr.mxu1 %v8527_v26 }
 0x5cb   :  { %7501 = vmatpush3.msra.mxu1 %v8527_v26  ;;  %v6111_v60 = vand.u32 4294901760, %v6110_v54 }
 0x5cc   :  { %7502 = vmatprep.subr.mxu1 %v8537_v63 }
 0x5cd   :  { %7503 = vmatpush3.msra.mxu1 %v8537_v63  ;;  %7471 = vmatprep.mubr.f32.mxu0 %v6111_v60 }
 0x5ce   :  { %7505 = vmatmul.mubr.f32.vlgmr.msra.gmra.mxu1 %v6119_v56  ;;  %7518 = vmatprep.subr.mxu1 %v8510_v34 }
 0x5cf   :  { %7472 = vmatmul.mubr.f32.vlgmr.msra.gmra.mxu0 %v6121_v61  ;;  %7519 = vmatpush3.msra.mxu1 %v8510_v34 }
 0x5d0   :  { %7486 = vmatpush3.msra.mxu0 %v8513_v18  ;;  %7526 = vmatprep.mubr.f32.mxu1 %v6107_v2  ;;  %v6592_v18 = vld [vmem:[#allocation16] ss:$0 sm:$0xff] }
 0x5d1   :  { %7487 = vmatprep.subr.mxu0 %v8525_v58  ;;  %7493 = vmatprep.mubr.f32.mxu0 %v6108_v52 }
 0x5d2   :  { %7520 = vmatprep.subr.mxu1 %v8522_v55  ;;  %7488 = vmatpush3.msra.mxu0 %v8525_v58 }
 0x5d3   :  { %7521 = vmatpush3.msra.mxu1 %v8522_v55  ;;  %7489 = vmatprep.subr.mxu0 %v8535_v49 }
 0x5d4   :  { %7522 = vmatprep.subr.mxu1 %v8527_v26  ;;  %7490 = vmatpush3.msra.mxu0 %v8535_v49 }
 0x5d5   :  { %7523 = vmatpush3.msra.mxu1 %v8527_v26  ;;  %7491 = vmatprep.subr.mxu0 %v8547_v5 }
 0x5d6   :  { %7524 = vmatprep.subr.mxu1 %v8537_v63  ;;  %7492 = vmatpush3.msra.mxu0 %v8547_v5 }
 0x5d7   :  { %7525 = vmatpush3.msra.mxu1 %v8537_v63  ;;  %7494 = vmatmul.mubr.f32.vlgmr.msra.gmra.mxu0 %v6118_v51 }
 0x5d8   :  { %7507 = vmatprep.subr.mxu0 %v8518_v41  ;;  %7527 = vmatmul.mubr.f32.vlgmr.msra.gmra.mxu1 %v6117_v46 }
 0x5d9   :  { %7508 = vmatpush3.msra.mxu0 %v8518_v41  ;;  %7515 = vmatprep.mubr.f32.mxu0 %v6107_v2 }
 0x5da   :  { %7509 = vmatprep.subr.mxu0 %v8532_v62 }
 0x5db   :  { %7510 = vmatpush3.msra.mxu0 %v8532_v62 }
 0x5dc   :  { %7511 = vmatprep.subr.mxu0 %v8544_v1 }
 0x5dd   :  { %7512 = vmatpush3.msra.mxu0 %v8544_v1 }
 0x5de   :  { %7513 = vmatprep.subr.mxu0 %v8554_v10 }
 0x5df   :  { %7514 = vmatpush3.msra.mxu0 %v8554_v10 }
 0x5e0   :  { %7516 = vmatmul.mubr.f32.vlgmr.msra.gmra.mxu0 %v6117_v46 }
 0x686   :  { %v7484_v55 = vpop.f32.mrf.mxu1 }
 0x688   :  { %v6214_v63 = vpop.f32.mrf.mxu1 }
 0x68e   :  { %v7506_v5 = vpop.f32.mrf.mxu1 }
 0x68f   :  { %v7473_v34 = vpop.f32.mrf.mxu0 }
 0x690   :  { %v6124_v26 = vadd.f32 %v7473_v34, %v6592_v18  ;;  %v6384_v1 = vpop.f32.mrf.mxu1 }
 0x691   :  { %v6113_v58 = vpop.f32.mrf.mxu0 }
 0x692   :  { %v6114_v41 = vadd.f32 %v6592_v18, %v6113_v58  ;;  %v6221_v0 = vadd.f32 %v7484_v55, %v6124_v26 }
 0x694   :  { %v6215_v45 = vadd.f32 %v6214_v63, %v6114_v41 }
 0x697   :  { %v7495_v49 = vpop.f32.mrf.mxu0 }
 0x698   :  { %v6308_v7 = vadd.f32 %v7495_v49, %v6221_v0  ;;  %v7528_v48 = vpop.f32.mrf.mxu1 }
 0x699   :  { %v6300_v62 = vpop.f32.mrf.mxu0 }
 0x69a   :  { %v6301_v50 = vadd.f32 %v6300_v62, %v6215_v45  ;;  %v6393_v8 = vadd.f32 %v7506_v5, %v6308_v7  ;;  %v6556_v24 = vpop.f32.mrf.mxu1 }
 0x69c   :  { %v6385_v3 = vadd.f32 %v6384_v1, %v6301_v50 }
 0x6a0   :  { %v7517_v6 = vpop.f32.mrf.mxu0 }
 0x6a1   :  { %v6482_v10 = vadd.f32 %v7517_v6, %v6393_v8 }
 0x6a2   :  { %v6475_v4 = vpop.f32.mrf.mxu0 }
 0x6a3   :  { %v6563_v28 = vadd.f32 %v7528_v48, %v6482_v10  ;;  %v6476_v14 = vadd.f32 %v6475_v4, %v6385_v3 }
 0x6a5   :  { %6567 = vst.msk [vmem:[#allocation17 + $0x8] sm:$0xff] %vm163_vm0, %v6563_v28  ;;  %v6557_v19 = vadd.f32 %v6556_v24, %v6476_v14 }
 0x6a7   :  { %6566 = vst.msk [vmem:[#allocation17] sm:$0xff] %vm163_vm0, %v6557_v19 }
 0x6a8   :  { %7769 = shalt.err (!%p7766_p7)
}
 0x6a9   :  { %6579 = dma.vmem_to_hbm [thread:$0]  %s6574_s24, 256, %s8618_s10, [#allocation4], %s7792_s18, %s7792_s18, %s7793_s19  }
 0x6aa   :  { %7788 = dma.done.wait [#allocation4], 256  }
 0x6ab   :  { %7789 = vsyncadd [#allocation4], 4294967040 }
 0x6ac   :  { %6583 = vsyncpa [#allocation3], 1 }
 0x6ad   :  { %6584 = vsyncpa [#allocation6], 1 }
 0x6ae   :  { %6585 = vsyncpa [#allocation9], 1 }
 0x6af   :  { %6586 = vsyncpa [#allocation12], 1 }
 0x6b0   :  { %6587 = vsyncpa [#allocation15], 1 }
 0x6b1   :  { %6588 = vsyncpa [#allocation4], 1 }

</bundles_post_ra>
